<compile_context>
chip_gen: v5e
topology: v5e:2x2
jax: 0.10.0
libtpu: 0.0.40
codegen_flags: <defaults>
</compile_context>

<pallas_src>
import functools

import jax
import jax.numpy as jnp
from jax.experimental import pallas as pl

LN_EPS = 1e-5


# ----------------------------------------------------------------------------
# In-kernel helpers
# ----------------------------------------------------------------------------
def _layernorm(x, gamma, beta):
    mu = jnp.mean(x, axis=-1, keepdims=True)
    var = jnp.mean((x - mu) ** 2, axis=-1, keepdims=True)
    return (x - mu) * jax.lax.rsqrt(var + LN_EPS) * gamma + beta


def _gelu_exact(x):
    # exact (erf-based) GELU, matching torch.nn.functional.gelu default
    return 0.5 * x * (1.0 + jax.lax.erf(x * (2.0 ** -0.5)))


# ----------------------------------------------------------------------------
# Fused Transformer kernel (embedding + all layers in one pallas_call)
# ----------------------------------------------------------------------------
def _transformer_kernel(x_ref, ew_ref, eb_ref,
                        ln1g_ref, ln1b_ref, wqkv_ref, wprojh_ref, bproj_ref,
                        ln2g_ref, ln2b_ref, w1_ref, b1_ref, w2_ref, b2_ref,
                        o_ref, *, batch, tokens, num_heads, depth, scale):
    B, N, H = batch, tokens, num_heads

    # Embedding: Linear(n_features, dim), batch folded into rows.
    h = (jnp.dot(x_ref[...], ew_ref[...], preferred_element_type=jnp.float32)
         + eb_ref[...])                                   # (B*N, C)
    C = h.shape[-1]
    D = C // H
    inner = w2_ref.shape[1]                               # dim * mult

    for l in range(depth):                                # static unroll over layers
        # ---------------- Residual(PreNorm(Attention)) ----------------
        xn = _layernorm(h, ln1g_ref[l], ln1b_ref[l])                        # (B*N, C)
        qkv = jnp.dot(xn, wqkv_ref[l], preferred_element_type=jnp.float32)  # (B*N, 3C)
        q2 = qkv[:, :C]
        k2 = qkv[:, C:2 * C]
        v2 = qkv[:, 2 * C:]
        wprojh = wprojh_ref[l]                                              # (H, D, C)

        proj_rows = []
        for b in range(B):                                # attention is block-diagonal
            r0 = b * N                                    # over batch -> static B loop
            q_h = jnp.stack([q2[r0:r0 + N, hh * D:(hh + 1) * D] for hh in range(H)], 0)
            k_h = jnp.stack([k2[r0:r0 + N, hh * D:(hh + 1) * D] for hh in range(H)], 0)
            v_h = jnp.stack([v2[r0:r0 + N, hh * D:(hh + 1) * D] for hh in range(H)], 0)
            # scores for all heads in one batched matmul: (H, N, N)
            s = jax.lax.dot_general(
                q_h, k_h, (((2,), (2,)), ((0,), (0,))),
                preferred_element_type=jnp.float32) * scale
            s = s - jnp.max(s, axis=-1, keepdims=True)
            p = jnp.exp(s)
            p = p * pl.reciprocal(jnp.sum(p, axis=-1, keepdims=True), approx=True)
            # p @ v for all heads: (H, N, D)
            o_h = jax.lax.dot_general(
                p, v_h, (((2,), (1,)), ((0,), (0,))),
                preferred_element_type=jnp.float32)
            # head-merge folded into the projection: (H, N, C) summed over heads
            contrib = jax.lax.dot_general(
                o_h, wprojh, (((2,), (1,)), ((0,), (0,))),
                preferred_element_type=jnp.float32)
            proj_rows.append(jnp.sum(contrib, axis=0))                      # (N, C)

        proj = jnp.concatenate(proj_rows, axis=0) + bproj_ref[l]            # (B*N, C)
        h = h + proj                                                        # residual

        # ---------------- Residual(PreNorm(FeedForward/GEGLU)) ----------------
        xn = _layernorm(h, ln2g_ref[l], ln2b_ref[l])
        ff = (jnp.dot(xn, w1_ref[l], preferred_element_type=jnp.float32)
              + b1_ref[l])                                                  # (B*N, 2*inner)
        a = ff[:, :inner]
        gates = ff[:, inner:]
        geglu = a * _gelu_exact(gates)
        out = (jnp.dot(geglu, w2_ref[l], preferred_element_type=jnp.float32)
               + b2_ref[l])
        h = h + out                                                         # residual

    o_ref[...] = h


# ----------------------------------------------------------------------------
# Wrapper: stacks per-layer params and issues a single pallas_call
# ----------------------------------------------------------------------------
def transformer_forward(params, x, *, num_heads):
    B, N, F = x.shape
    dim = params["embed_w"].shape[1]
    depth = len(params["layers"])
    D = dim // num_heads
    scale = D ** (-0.5)

    def stack(name):
        return jnp.stack([layer[name] for layer in params["layers"]], axis=0)

    ln1g = stack("ln1_g").reshape(depth, 1, dim)
    ln1b = stack("ln1_b").reshape(depth, 1, dim)
    wqkv = stack("wqkv")                                   # (L, C, 3C)
    # W_proj rearranged to (L, H, D, C): lets the kernel fold the head-merge into
    # the projection matmul (no per-head concatenate inside the kernel).
    wprojh = stack("wproj").reshape(depth, num_heads, D, dim)
    bproj = stack("bproj").reshape(depth, 1, dim)
    ln2g = stack("ln2_g").reshape(depth, 1, dim)
    ln2b = stack("ln2_b").reshape(depth, 1, dim)
    w1 = stack("w1")                                       # (L, C, 2*inner)
    b1 = stack("b1").reshape(depth, 1, -1)
    w2 = stack("w2")                                       # (L, inner, C)
    b2 = stack("b2").reshape(depth, 1, dim)

    kern = functools.partial(_transformer_kernel, batch=B, tokens=N,
                             num_heads=num_heads, depth=depth, scale=scale)
    out = pl.pallas_call(
        kern,
        out_shape=jax.ShapeDtypeStruct((B * N, dim), jnp.float32),
    )(x.reshape(B * N, F),
      params["embed_w"], params["embed_b"].reshape(1, dim),
      ln1g, ln1b, wqkv, wprojh, bproj, ln2g, ln2b, w1, b1, w2, b2)
    return out.reshape(B, N, dim)


# ----------------------------------------------------------------------------
# Parameter construction (deterministic, synthetic)
# ----------------------------------------------------------------------------
def init_params(key, n_features, depth, dim, mult=4):
    params = {}
    key, k_e = jax.random.split(key)
    params["embed_w"] = 0.02 * jax.random.normal(k_e, (n_features, dim), jnp.float32)
    params["embed_b"] = jnp.zeros((dim,), jnp.float32)
    layers = []
    for _ in range(depth):
        key, k1, k2, k3, k4 = jax.random.split(key, 5)
        layers.append({
            "ln1_g": jnp.ones((dim,), jnp.float32),
            "ln1_b": jnp.zeros((dim,), jnp.float32),
            "wqkv": 0.02 * jax.random.normal(k1, (dim, 3 * dim), jnp.float32),
            "wproj": 0.02 * jax.random.normal(k2, (dim, dim), jnp.float32),
            "bproj": jnp.zeros((dim,), jnp.float32),
            "ln2_g": jnp.ones((dim,), jnp.float32),
            "ln2_b": jnp.zeros((dim,), jnp.float32),
            "w1": 0.02 * jax.random.normal(k3, (dim, dim * mult * 2), jnp.float32),
            "b1": jnp.zeros((dim * mult * 2,), jnp.float32),
            "w2": 0.02 * jax.random.normal(k4, (dim * mult, dim), jnp.float32),
            "b2": jnp.zeros((dim,), jnp.float32),
        })
    params["layers"] = layers
    return params


# ----------------------------------------------------------------------------
# Pure-JAX reference (for the correctness check)
# ----------------------------------------------------------------------------
def _reference_forward(params, x, *, num_heads):
    B, N, F = x.shape
    dim = params["embed_w"].shape[1]
    D = dim // num_heads
    scale = D ** (-0.5)
    x = x @ params["embed_w"] + params["embed_b"]
    for layer in params["layers"]:
        xn = _layernorm(x, layer["ln1_g"], layer["ln1_b"])
        qkv = xn @ layer["wqkv"]
        q, k, v = jnp.split(qkv, 3, axis=-1)
        q = q.reshape(B, N, num_heads, D).transpose(0, 2, 1, 3)
        k = k.reshape(B, N, num_heads, D).transpose(0, 2, 1, 3)
        v = v.reshape(B, N, num_heads, D).transpose(0, 2, 1, 3)
        attn = jax.nn.softmax(jnp.einsum("bhnd,bhmd->bhnm", q, k) * scale, axis=-1)
        o = jnp.einsum("bhnm,bhmd->bhnd", attn, v).transpose(0, 2, 1, 3).reshape(B, N, dim)
        x = o @ layer["wproj"] + layer["bproj"] + x
        xn = _layernorm(x, layer["ln2_g"], layer["ln2_b"])
        h = xn @ layer["w1"] + layer["b1"]
        a, g = jnp.split(h, 2, axis=-1)
        x = (a * _gelu_exact(g)) @ layer["w2"] + layer["b2"] + x
    return x


if __name__ == "__main__":
    # Small shapes consistent with the module's forward: x is (B, N, n_features)
    B, N, n_features = 2, 8, 16
    dim, num_heads, depth = 32, 4, 2

    key = jax.random.PRNGKey(0)
    key, kx, kp = jax.random.split(key, 3)
    x = jax.random.normal(kx, (B, N, n_features), jnp.float32)
    params = init_params(kp, n_features, depth, dim)

    out = transformer_forward(params, x, num_heads=num_heads)
    out = jax.block_until_ready(out)

    ref = _reference_forward(params, x, num_heads=num_heads)
    assert out.shape == (B, N, dim)
    # tolerance accounts for pl.reciprocal(approx=True) in the softmax denominator
    assert jnp.allclose(out, ref, atol=1e-2, rtol=1e-2), "mismatch vs reference"

    print("KERNEL_OK")
</pallas_src>

<mosaic_0001>
module attributes {stable_mosaic.version = 11 : i64} {
  func.func @_transformer_kernel(%arg0: memref<16x16xf32, #tpu.memory_space<vmem>>, %arg1: memref<16x32xf32, #tpu.memory_space<vmem>>, %arg2: memref<1x32xf32, #tpu.memory_space<vmem>>, %arg3: memref<2x1x32xf32, #tpu.memory_space<vmem>>, %arg4: memref<2x1x32xf32, #tpu.memory_space<vmem>>, %arg5: memref<2x32x96xf32, #tpu.memory_space<vmem>>, %arg6: memref<2x4x8x32xf32, #tpu.memory_space<vmem>>, %arg7: memref<2x1x32xf32, #tpu.memory_space<vmem>>, %arg8: memref<2x1x32xf32, #tpu.memory_space<vmem>>, %arg9: memref<2x1x32xf32, #tpu.memory_space<vmem>>, %arg10: memref<2x32x256xf32, #tpu.memory_space<vmem>>, %arg11: memref<2x1x256xf32, #tpu.memory_space<vmem>>, %arg12: memref<2x128x32xf32, #tpu.memory_space<vmem>>, %arg13: memref<2x1x32xf32, #tpu.memory_space<vmem>>, %arg14: memref<16x32xf32, #tpu.memory_space<vmem>>) attributes {dimension_semantics = [], scalar_prefetch = 0 : i64, scratch_operands = 0 : i64, tpu.core_type = #tpu.core_type<tc>} {
    %c0 = arith.constant 0 : index
    %c0_0 = arith.constant 0 : index
    %0 = vector.load %arg0[%c0, %c0_0] : memref<16x16xf32, #tpu.memory_space<vmem>>, vector<16x16xf32>
    %c0_1 = arith.constant 0 : index
    %c0_2 = arith.constant 0 : index
    %1 = vector.load %arg1[%c0_1, %c0_2] : memref<16x32xf32, #tpu.memory_space<vmem>>, vector<16x32xf32>
    %cst = arith.constant dense<0.000000e+00> : vector<16x32xf32>
    %2 = tpu.matmul %0, %1, %cst {dimension_numbers = #tpu.dot_dimension_numbers<[1], [0], [0], [1], [0, 0, 1, 1], [], []>} : vector<16x16xf32>, vector<16x32xf32>, vector<16x32xf32> -> vector<16x32xf32>
    %c0_3 = arith.constant 0 : index
    %c0_4 = arith.constant 0 : index
    %3 = vector.load %arg2[%c0_3, %c0_4] : memref<1x32xf32, #tpu.memory_space<vmem>>, vector<1x32xf32>
    %4 = vector.broadcast %3 : vector<1x32xf32> to vector<16x32xf32>
    %5 = arith.addf %2, %4 : vector<16x32xf32>
    %c0_5 = arith.constant 0 : index
    %c0_6 = arith.constant 0 : index
    %c0_7 = arith.constant 0 : index
    %6 = vector.load %arg3[%c0_5, %c0_6, %c0_7] : memref<2x1x32xf32, #tpu.memory_space<vmem>>, vector<1x1x32xf32>
    %7 = vector.shape_cast %6 : vector<1x1x32xf32> to vector<1x32xf32>
    %c0_8 = arith.constant 0 : index
    %c0_9 = arith.constant 0 : index
    %c0_10 = arith.constant 0 : index
    %8 = vector.load %arg4[%c0_8, %c0_9, %c0_10] : memref<2x1x32xf32, #tpu.memory_space<vmem>>, vector<1x1x32xf32>
    %9 = vector.shape_cast %8 : vector<1x1x32xf32> to vector<1x32xf32>
    %cst_11 = arith.constant dense<0.000000e+00> : vector<16xf32>
    %10 = vector.multi_reduction <add>, %5, %cst_11 [1] : vector<16x32xf32> to vector<16xf32>
    %11 = vector.shape_cast %10 : vector<16xf32> to vector<16x1xf32>
    %cst_12 = arith.constant 3.200000e+01 : f32
    %12 = vector.broadcast %cst_12 : f32 to vector<16x1xf32>
    %13 = arith.divf %11, %12 : vector<16x1xf32>
    %14 = vector.broadcast %13 : vector<16x1xf32> to vector<16x32xf32>
    %15 = arith.subf %5, %14 : vector<16x32xf32>
    %16 = arith.mulf %15, %15 : vector<16x32xf32>
    %cst_13 = arith.constant dense<0.000000e+00> : vector<16xf32>
    %17 = vector.multi_reduction <add>, %16, %cst_13 [1] : vector<16x32xf32> to vector<16xf32>
    %18 = vector.shape_cast %17 : vector<16xf32> to vector<16x1xf32>
    %cst_14 = arith.constant 3.200000e+01 : f32
    %19 = vector.broadcast %cst_14 : f32 to vector<16x1xf32>
    %20 = arith.divf %18, %19 : vector<16x1xf32>
    %21 = vector.broadcast %13 : vector<16x1xf32> to vector<16x32xf32>
    %22 = arith.subf %5, %21 : vector<16x32xf32>
    %cst_15 = arith.constant 9.99999974E-6 : f32
    %23 = vector.broadcast %cst_15 : f32 to vector<16x1xf32>
    %24 = arith.addf %20, %23 : vector<16x1xf32>
    %25 = math.rsqrt %24 : vector<16x1xf32>
    %26 = vector.broadcast %25 : vector<16x1xf32> to vector<16x32xf32>
    %27 = arith.mulf %22, %26 : vector<16x32xf32>
    %28 = vector.broadcast %7 : vector<1x32xf32> to vector<16x32xf32>
    %29 = arith.mulf %27, %28 : vector<16x32xf32>
    %30 = vector.broadcast %9 : vector<1x32xf32> to vector<16x32xf32>
    %31 = arith.addf %29, %30 : vector<16x32xf32>
    %c0_16 = arith.constant 0 : index
    %c0_17 = arith.constant 0 : index
    %c0_18 = arith.constant 0 : index
    %32 = vector.load %arg5[%c0_16, %c0_17, %c0_18] : memref<2x32x96xf32, #tpu.memory_space<vmem>>, vector<1x32x96xf32>
    %33 = vector.shape_cast %32 : vector<1x32x96xf32> to vector<32x96xf32>
    %cst_19 = arith.constant dense<0.000000e+00> : vector<16x96xf32>
    %34 = tpu.matmul %31, %33, %cst_19 {dimension_numbers = #tpu.dot_dimension_numbers<[1], [0], [0], [1], [0, 0, 1, 1], [], []>} : vector<16x32xf32>, vector<32x96xf32>, vector<16x96xf32> -> vector<16x96xf32>
    %35 = vector.extract_strided_slice %34 {offsets = [0, 0], sizes = [16, 32], strides = [1, 1]} : vector<16x96xf32> to vector<16x32xf32>
    %36 = vector.extract_strided_slice %34 {offsets = [0, 32], sizes = [16, 32], strides = [1, 1]} : vector<16x96xf32> to vector<16x32xf32>
    %37 = vector.extract_strided_slice %34 {offsets = [0, 64], sizes = [16, 32], strides = [1, 1]} : vector<16x96xf32> to vector<16x32xf32>
    %c0_20 = arith.constant 0 : index
    %c0_21 = arith.constant 0 : index
    %c0_22 = arith.constant 0 : index
    %c0_23 = arith.constant 0 : index
    %38 = vector.load %arg6[%c0_20, %c0_21, %c0_22, %c0_23] : memref<2x4x8x32xf32, #tpu.memory_space<vmem>>, vector<1x4x8x32xf32>
    %39 = vector.shape_cast %38 : vector<1x4x8x32xf32> to vector<4x8x32xf32>
    %40 = vector.extract_strided_slice %35 {offsets = [0, 0], sizes = [8, 8], strides = [1, 1]} : vector<16x32xf32> to vector<8x8xf32>
    %41 = vector.extract_strided_slice %35 {offsets = [0, 8], sizes = [8, 8], strides = [1, 1]} : vector<16x32xf32> to vector<8x8xf32>
    %42 = vector.extract_strided_slice %35 {offsets = [0, 16], sizes = [8, 8], strides = [1, 1]} : vector<16x32xf32> to vector<8x8xf32>
    %43 = vector.extract_strided_slice %35 {offsets = [0, 24], sizes = [8, 8], strides = [1, 1]} : vector<16x32xf32> to vector<8x8xf32>
    %44 = vector.shape_cast %40 : vector<8x8xf32> to vector<1x8x8xf32>
    %45 = vector.shape_cast %41 : vector<8x8xf32> to vector<1x8x8xf32>
    %46 = vector.shape_cast %42 : vector<8x8xf32> to vector<1x8x8xf32>
    %47 = vector.shape_cast %43 : vector<8x8xf32> to vector<1x8x8xf32>
    %48 = tpu.concatenate %44, %45, %46, %47 in 0 : vector<1x8x8xf32>, vector<1x8x8xf32>, vector<1x8x8xf32>, vector<1x8x8xf32> -> vector<4x8x8xf32>
    %49 = vector.extract_strided_slice %36 {offsets = [0, 0], sizes = [8, 8], strides = [1, 1]} : vector<16x32xf32> to vector<8x8xf32>
    %50 = vector.extract_strided_slice %36 {offsets = [0, 8], sizes = [8, 8], strides = [1, 1]} : vector<16x32xf32> to vector<8x8xf32>
    %51 = vector.extract_strided_slice %36 {offsets = [0, 16], sizes = [8, 8], strides = [1, 1]} : vector<16x32xf32> to vector<8x8xf32>
    %52 = vector.extract_strided_slice %36 {offsets = [0, 24], sizes = [8, 8], strides = [1, 1]} : vector<16x32xf32> to vector<8x8xf32>
    %53 = vector.shape_cast %49 : vector<8x8xf32> to vector<1x8x8xf32>
    %54 = vector.shape_cast %50 : vector<8x8xf32> to vector<1x8x8xf32>
    %55 = vector.shape_cast %51 : vector<8x8xf32> to vector<1x8x8xf32>
    %56 = vector.shape_cast %52 : vector<8x8xf32> to vector<1x8x8xf32>
    %57 = tpu.concatenate %53, %54, %55, %56 in 0 : vector<1x8x8xf32>, vector<1x8x8xf32>, vector<1x8x8xf32>, vector<1x8x8xf32> -> vector<4x8x8xf32>
    %58 = vector.extract_strided_slice %37 {offsets = [0, 0], sizes = [8, 8], strides = [1, 1]} : vector<16x32xf32> to vector<8x8xf32>
    %59 = vector.extract_strided_slice %37 {offsets = [0, 8], sizes = [8, 8], strides = [1, 1]} : vector<16x32xf32> to vector<8x8xf32>
    %60 = vector.extract_strided_slice %37 {offsets = [0, 16], sizes = [8, 8], strides = [1, 1]} : vector<16x32xf32> to vector<8x8xf32>
    %61 = vector.extract_strided_slice %37 {offsets = [0, 24], sizes = [8, 8], strides = [1, 1]} : vector<16x32xf32> to vector<8x8xf32>
    %62 = vector.shape_cast %58 : vector<8x8xf32> to vector<1x8x8xf32>
    %63 = vector.shape_cast %59 : vector<8x8xf32> to vector<1x8x8xf32>
    %64 = vector.shape_cast %60 : vector<8x8xf32> to vector<1x8x8xf32>
    %65 = vector.shape_cast %61 : vector<8x8xf32> to vector<1x8x8xf32>
    %66 = tpu.concatenate %62, %63, %64, %65 in 0 : vector<1x8x8xf32>, vector<1x8x8xf32>, vector<1x8x8xf32>, vector<1x8x8xf32> -> vector<4x8x8xf32>
    %cst_24 = arith.constant dense<0.000000e+00> : vector<4x8x8xf32>
    %67 = tpu.matmul %48, %57, %cst_24 {dimension_numbers = #tpu.dot_dimension_numbers<[2], [2], [1], [1], [0, 0, 0, 1, 1, 1], [0], [0]>} : vector<4x8x8xf32>, vector<4x8x8xf32>, vector<4x8x8xf32> -> vector<4x8x8xf32>
    %cst_25 = arith.constant 0.353553385 : f32
    %68 = vector.broadcast %cst_25 : f32 to vector<4x8x8xf32>
    %69 = arith.mulf %67, %68 : vector<4x8x8xf32>
    %cst_26 = arith.constant dense<0xFF800000> : vector<4x8xf32>
    %70 = vector.multi_reduction <maximumf>, %69, %cst_26 [2] : vector<4x8x8xf32> to vector<4x8xf32>
    %71 = vector.shape_cast %70 : vector<4x8xf32> to vector<4x8x1xf32>
    %72 = vector.broadcast %71 : vector<4x8x1xf32> to vector<4x8x8xf32>
    %73 = arith.subf %69, %72 : vector<4x8x8xf32>
    %74 = math.exp %73 : vector<4x8x8xf32>
    %cst_27 = arith.constant dense<0.000000e+00> : vector<4x8xf32>
    %75 = vector.multi_reduction <add>, %74, %cst_27 [2] : vector<4x8x8xf32> to vector<4x8xf32>
    %76 = vector.shape_cast %75 : vector<4x8xf32> to vector<4x8x1xf32>
    %77 = tpu.reciprocal %76 {approx = true} : vector<4x8x1xf32> -> vector<4x8x1xf32>
    %78 = vector.broadcast %77 : vector<4x8x1xf32> to vector<4x8x8xf32>
    %79 = arith.mulf %74, %78 : vector<4x8x8xf32>
    %cst_28 = arith.constant dense<0.000000e+00> : vector<4x8x8xf32>
    %80 = tpu.matmul %79, %66, %cst_28 {dimension_numbers = #tpu.dot_dimension_numbers<[2], [1], [1], [2], [0, 0, 0, 1, 1, 2], [0], [0]>} : vector<4x8x8xf32>, vector<4x8x8xf32>, vector<4x8x8xf32> -> vector<4x8x8xf32>
    %cst_29 = arith.constant dense<0.000000e+00> : vector<4x8x32xf32>
    %81 = tpu.matmul %80, %39, %cst_29 {dimension_numbers = #tpu.dot_dimension_numbers<[2], [1], [1], [2], [0, 0, 0, 1, 1, 2], [0], [0]>} : vector<4x8x8xf32>, vector<4x8x32xf32>, vector<4x8x32xf32> -> vector<4x8x32xf32>
    %cst_30 = arith.constant dense<0.000000e+00> : vector<8x32xf32>
    %82 = vector.multi_reduction <add>, %81, %cst_30 [0] : vector<4x8x32xf32> to vector<8x32xf32>
    %83 = vector.extract_strided_slice %35 {offsets = [8, 0], sizes = [8, 8], strides = [1, 1]} : vector<16x32xf32> to vector<8x8xf32>
    %84 = vector.extract_strided_slice %35 {offsets = [8, 8], sizes = [8, 8], strides = [1, 1]} : vector<16x32xf32> to vector<8x8xf32>
    %85 = vector.extract_strided_slice %35 {offsets = [8, 16], sizes = [8, 8], strides = [1, 1]} : vector<16x32xf32> to vector<8x8xf32>
    %86 = vector.extract_strided_slice %35 {offsets = [8, 24], sizes = [8, 8], strides = [1, 1]} : vector<16x32xf32> to vector<8x8xf32>
    %87 = vector.shape_cast %83 : vector<8x8xf32> to vector<1x8x8xf32>
    %88 = vector.shape_cast %84 : vector<8x8xf32> to vector<1x8x8xf32>
    %89 = vector.shape_cast %85 : vector<8x8xf32> to vector<1x8x8xf32>
    %90 = vector.shape_cast %86 : vector<8x8xf32> to vector<1x8x8xf32>
    %91 = tpu.concatenate %87, %88, %89, %90 in 0 : vector<1x8x8xf32>, vector<1x8x8xf32>, vector<1x8x8xf32>, vector<1x8x8xf32> -> vector<4x8x8xf32>
    %92 = vector.extract_strided_slice %36 {offsets = [8, 0], sizes = [8, 8], strides = [1, 1]} : vector<16x32xf32> to vector<8x8xf32>
    %93 = vector.extract_strided_slice %36 {offsets = [8, 8], sizes = [8, 8], strides = [1, 1]} : vector<16x32xf32> to vector<8x8xf32>
    %94 = vector.extract_strided_slice %36 {offsets = [8, 16], sizes = [8, 8], strides = [1, 1]} : vector<16x32xf32> to vector<8x8xf32>
    %95 = vector.extract_strided_slice %36 {offsets = [8, 24], sizes = [8, 8], strides = [1, 1]} : vector<16x32xf32> to vector<8x8xf32>
    %96 = vector.shape_cast %92 : vector<8x8xf32> to vector<1x8x8xf32>
    %97 = vector.shape_cast %93 : vector<8x8xf32> to vector<1x8x8xf32>
    %98 = vector.shape_cast %94 : vector<8x8xf32> to vector<1x8x8xf32>
    %99 = vector.shape_cast %95 : vector<8x8xf32> to vector<1x8x8xf32>
    %100 = tpu.concatenate %96, %97, %98, %99 in 0 : vector<1x8x8xf32>, vector<1x8x8xf32>, vector<1x8x8xf32>, vector<1x8x8xf32> -> vector<4x8x8xf32>
    %101 = vector.extract_strided_slice %37 {offsets = [8, 0], sizes = [8, 8], strides = [1, 1]} : vector<16x32xf32> to vector<8x8xf32>
    %102 = vector.extract_strided_slice %37 {offsets = [8, 8], sizes = [8, 8], strides = [1, 1]} : vector<16x32xf32> to vector<8x8xf32>
    %103 = vector.extract_strided_slice %37 {offsets = [8, 16], sizes = [8, 8], strides = [1, 1]} : vector<16x32xf32> to vector<8x8xf32>
    %104 = vector.extract_strided_slice %37 {offsets = [8, 24], sizes = [8, 8], strides = [1, 1]} : vector<16x32xf32> to vector<8x8xf32>
    %105 = vector.shape_cast %101 : vector<8x8xf32> to vector<1x8x8xf32>
    %106 = vector.shape_cast %102 : vector<8x8xf32> to vector<1x8x8xf32>
    %107 = vector.shape_cast %103 : vector<8x8xf32> to vector<1x8x8xf32>
    %108 = vector.shape_cast %104 : vector<8x8xf32> to vector<1x8x8xf32>
    %109 = tpu.concatenate %105, %106, %107, %108 in 0 : vector<1x8x8xf32>, vector<1x8x8xf32>, vector<1x8x8xf32>, vector<1x8x8xf32> -> vector<4x8x8xf32>
    %cst_31 = arith.constant dense<0.000000e+00> : vector<4x8x8xf32>
    %110 = tpu.matmul %91, %100, %cst_31 {dimension_numbers = #tpu.dot_dimension_numbers<[2], [2], [1], [1], [0, 0, 0, 1, 1, 1], [0], [0]>} : vector<4x8x8xf32>, vector<4x8x8xf32>, vector<4x8x8xf32> -> vector<4x8x8xf32>
    %cst_32 = arith.constant 0.353553385 : f32
    %111 = vector.broadcast %cst_32 : f32 to vector<4x8x8xf32>
    %112 = arith.mulf %110, %111 : vector<4x8x8xf32>
    %cst_33 = arith.constant dense<0xFF800000> : vector<4x8xf32>
    %113 = vector.multi_reduction <maximumf>, %112, %cst_33 [2] : vector<4x8x8xf32> to vector<4x8xf32>
    %114 = vector.shape_cast %113 : vector<4x8xf32> to vector<4x8x1xf32>
    %115 = vector.broadcast %114 : vector<4x8x1xf32> to vector<4x8x8xf32>
    %116 = arith.subf %112, %115 : vector<4x8x8xf32>
    %117 = math.exp %116 : vector<4x8x8xf32>
    %cst_34 = arith.constant dense<0.000000e+00> : vector<4x8xf32>
    %118 = vector.multi_reduction <add>, %117, %cst_34 [2] : vector<4x8x8xf32> to vector<4x8xf32>
    %119 = vector.shape_cast %118 : vector<4x8xf32> to vector<4x8x1xf32>
    %120 = tpu.reciprocal %119 {approx = true} : vector<4x8x1xf32> -> vector<4x8x1xf32>
    %121 = vector.broadcast %120 : vector<4x8x1xf32> to vector<4x8x8xf32>
    %122 = arith.mulf %117, %121 : vector<4x8x8xf32>
    %cst_35 = arith.constant dense<0.000000e+00> : vector<4x8x8xf32>
    %123 = tpu.matmul %122, %109, %cst_35 {dimension_numbers = #tpu.dot_dimension_numbers<[2], [1], [1], [2], [0, 0, 0, 1, 1, 2], [0], [0]>} : vector<4x8x8xf32>, vector<4x8x8xf32>, vector<4x8x8xf32> -> vector<4x8x8xf32>
    %cst_36 = arith.constant dense<0.000000e+00> : vector<4x8x32xf32>
    %124 = tpu.matmul %123, %39, %cst_36 {dimension_numbers = #tpu.dot_dimension_numbers<[2], [1], [1], [2], [0, 0, 0, 1, 1, 2], [0], [0]>} : vector<4x8x8xf32>, vector<4x8x32xf32>, vector<4x8x32xf32> -> vector<4x8x32xf32>
    %cst_37 = arith.constant dense<0.000000e+00> : vector<8x32xf32>
    %125 = vector.multi_reduction <add>, %124, %cst_37 [0] : vector<4x8x32xf32> to vector<8x32xf32>
    %126 = tpu.concatenate %82, %125 in 0 : vector<8x32xf32>, vector<8x32xf32> -> vector<16x32xf32>
    %c0_38 = arith.constant 0 : index
    %c0_39 = arith.constant 0 : index
    %c0_40 = arith.constant 0 : index
    %127 = vector.load %arg7[%c0_38, %c0_39, %c0_40] : memref<2x1x32xf32, #tpu.memory_space<vmem>>, vector<1x1x32xf32>
    %128 = vector.shape_cast %127 : vector<1x1x32xf32> to vector<1x32xf32>
    %129 = vector.broadcast %128 : vector<1x32xf32> to vector<16x32xf32>
    %130 = arith.addf %126, %129 : vector<16x32xf32>
    %131 = arith.addf %5, %130 : vector<16x32xf32>
    %c0_41 = arith.constant 0 : index
    %c0_42 = arith.constant 0 : index
    %c0_43 = arith.constant 0 : index
    %132 = vector.load %arg8[%c0_41, %c0_42, %c0_43] : memref<2x1x32xf32, #tpu.memory_space<vmem>>, vector<1x1x32xf32>
    %133 = vector.shape_cast %132 : vector<1x1x32xf32> to vector<1x32xf32>
    %c0_44 = arith.constant 0 : index
    %c0_45 = arith.constant 0 : index
    %c0_46 = arith.constant 0 : index
    %134 = vector.load %arg9[%c0_44, %c0_45, %c0_46] : memref<2x1x32xf32, #tpu.memory_space<vmem>>, vector<1x1x32xf32>
    %135 = vector.shape_cast %134 : vector<1x1x32xf32> to vector<1x32xf32>
    %cst_47 = arith.constant dense<0.000000e+00> : vector<16xf32>
    %136 = vector.multi_reduction <add>, %131, %cst_47 [1] : vector<16x32xf32> to vector<16xf32>
    %137 = vector.shape_cast %136 : vector<16xf32> to vector<16x1xf32>
    %cst_48 = arith.constant 3.200000e+01 : f32
    %138 = vector.broadcast %cst_48 : f32 to vector<16x1xf32>
    %139 = arith.divf %137, %138 : vector<16x1xf32>
    %140 = vector.broadcast %139 : vector<16x1xf32> to vector<16x32xf32>
    %141 = arith.subf %131, %140 : vector<16x32xf32>
    %142 = arith.mulf %141, %141 : vector<16x32xf32>
    %cst_49 = arith.constant dense<0.000000e+00> : vector<16xf32>
    %143 = vector.multi_reduction <add>, %142, %cst_49 [1] : vector<16x32xf32> to vector<16xf32>
    %144 = vector.shape_cast %143 : vector<16xf32> to vector<16x1xf32>
    %cst_50 = arith.constant 3.200000e+01 : f32
    %145 = vector.broadcast %cst_50 : f32 to vector<16x1xf32>
    %146 = arith.divf %144, %145 : vector<16x1xf32>
    %147 = vector.broadcast %139 : vector<16x1xf32> to vector<16x32xf32>
    %148 = arith.subf %131, %147 : vector<16x32xf32>
    %cst_51 = arith.constant 9.99999974E-6 : f32
    %149 = vector.broadcast %cst_51 : f32 to vector<16x1xf32>
    %150 = arith.addf %146, %149 : vector<16x1xf32>
    %151 = math.rsqrt %150 : vector<16x1xf32>
    %152 = vector.broadcast %151 : vector<16x1xf32> to vector<16x32xf32>
    %153 = arith.mulf %148, %152 : vector<16x32xf32>
    %154 = vector.broadcast %133 : vector<1x32xf32> to vector<16x32xf32>
    %155 = arith.mulf %153, %154 : vector<16x32xf32>
    %156 = vector.broadcast %135 : vector<1x32xf32> to vector<16x32xf32>
    %157 = arith.addf %155, %156 : vector<16x32xf32>
    %c0_52 = arith.constant 0 : index
    %c0_53 = arith.constant 0 : index
    %c0_54 = arith.constant 0 : index
    %158 = vector.load %arg10[%c0_52, %c0_53, %c0_54] : memref<2x32x256xf32, #tpu.memory_space<vmem>>, vector<1x32x256xf32>
    %159 = vector.shape_cast %158 : vector<1x32x256xf32> to vector<32x256xf32>
    %cst_55 = arith.constant dense<0.000000e+00> : vector<16x256xf32>
    %160 = tpu.matmul %157, %159, %cst_55 {dimension_numbers = #tpu.dot_dimension_numbers<[1], [0], [0], [1], [0, 0, 1, 1], [], []>} : vector<16x32xf32>, vector<32x256xf32>, vector<16x256xf32> -> vector<16x256xf32>
    %c0_56 = arith.constant 0 : index
    %c0_57 = arith.constant 0 : index
    %c0_58 = arith.constant 0 : index
    %161 = vector.load %arg11[%c0_56, %c0_57, %c0_58] : memref<2x1x256xf32, #tpu.memory_space<vmem>>, vector<1x1x256xf32>
    %162 = vector.shape_cast %161 : vector<1x1x256xf32> to vector<1x256xf32>
    %163 = vector.broadcast %162 : vector<1x256xf32> to vector<16x256xf32>
    %164 = arith.addf %160, %163 : vector<16x256xf32>
    %165 = vector.extract_strided_slice %164 {offsets = [0, 0], sizes = [16, 128], strides = [1, 1]} : vector<16x256xf32> to vector<16x128xf32>
    %166 = vector.extract_strided_slice %164 {offsets = [0, 128], sizes = [16, 128], strides = [1, 1]} : vector<16x256xf32> to vector<16x128xf32>
    %cst_59 = arith.constant 5.000000e-01 : f32
    %167 = vector.broadcast %cst_59 : f32 to vector<16x128xf32>
    %168 = arith.mulf %167, %166 : vector<16x128xf32>
    %cst_60 = arith.constant 0.707106769 : f32
    %169 = vector.broadcast %cst_60 : f32 to vector<16x128xf32>
    %170 = arith.mulf %166, %169 : vector<16x128xf32>
    %171 = math.erf %170 : vector<16x128xf32>
    %cst_61 = arith.constant 1.000000e+00 : f32
    %172 = vector.broadcast %cst_61 : f32 to vector<16x128xf32>
    %173 = arith.addf %172, %171 : vector<16x128xf32>
    %174 = arith.mulf %168, %173 : vector<16x128xf32>
    %175 = arith.mulf %165, %174 : vector<16x128xf32>
    %c0_62 = arith.constant 0 : index
    %c0_63 = arith.constant 0 : index
    %c0_64 = arith.constant 0 : index
    %176 = vector.load %arg12[%c0_62, %c0_63, %c0_64] : memref<2x128x32xf32, #tpu.memory_space<vmem>>, vector<1x128x32xf32>
    %177 = vector.shape_cast %176 : vector<1x128x32xf32> to vector<128x32xf32>
    %cst_65 = arith.constant dense<0.000000e+00> : vector<16x32xf32>
    %178 = tpu.matmul %175, %177, %cst_65 {dimension_numbers = #tpu.dot_dimension_numbers<[1], [0], [0], [1], [0, 0, 1, 1], [], []>} : vector<16x128xf32>, vector<128x32xf32>, vector<16x32xf32> -> vector<16x32xf32>
    %c0_66 = arith.constant 0 : index
    %c0_67 = arith.constant 0 : index
    %c0_68 = arith.constant 0 : index
    %179 = vector.load %arg13[%c0_66, %c0_67, %c0_68] : memref<2x1x32xf32, #tpu.memory_space<vmem>>, vector<1x1x32xf32>
    %180 = vector.shape_cast %179 : vector<1x1x32xf32> to vector<1x32xf32>
    %181 = vector.broadcast %180 : vector<1x32xf32> to vector<16x32xf32>
    %182 = arith.addf %178, %181 : vector<16x32xf32>
    %183 = arith.addf %131, %182 : vector<16x32xf32>
    %c1 = arith.constant 1 : index
    %c0_69 = arith.constant 0 : index
    %c0_70 = arith.constant 0 : index
    %184 = vector.load %arg3[%c1, %c0_69, %c0_70] : memref<2x1x32xf32, #tpu.memory_space<vmem>>, vector<1x1x32xf32>
    %185 = vector.shape_cast %184 : vector<1x1x32xf32> to vector<1x32xf32>
    %c1_71 = arith.constant 1 : index
    %c0_72 = arith.constant 0 : index
    %c0_73 = arith.constant 0 : index
    %186 = vector.load %arg4[%c1_71, %c0_72, %c0_73] : memref<2x1x32xf32, #tpu.memory_space<vmem>>, vector<1x1x32xf32>
    %187 = vector.shape_cast %186 : vector<1x1x32xf32> to vector<1x32xf32>
    %cst_74 = arith.constant dense<0.000000e+00> : vector<16xf32>
    %188 = vector.multi_reduction <add>, %183, %cst_74 [1] : vector<16x32xf32> to vector<16xf32>
    %189 = vector.shape_cast %188 : vector<16xf32> to vector<16x1xf32>
    %cst_75 = arith.constant 3.200000e+01 : f32
    %190 = vector.broadcast %cst_75 : f32 to vector<16x1xf32>
    %191 = arith.divf %189, %190 : vector<16x1xf32>
    %192 = vector.broadcast %191 : vector<16x1xf32> to vector<16x32xf32>
    %193 = arith.subf %183, %192 : vector<16x32xf32>
    %194 = arith.mulf %193, %193 : vector<16x32xf32>
    %cst_76 = arith.constant dense<0.000000e+00> : vector<16xf32>
    %195 = vector.multi_reduction <add>, %194, %cst_76 [1] : vector<16x32xf32> to vector<16xf32>
    %196 = vector.shape_cast %195 : vector<16xf32> to vector<16x1xf32>
    %cst_77 = arith.constant 3.200000e+01 : f32
    %197 = vector.broadcast %cst_77 : f32 to vector<16x1xf32>
    %198 = arith.divf %196, %197 : vector<16x1xf32>
    %199 = vector.broadcast %191 : vector<16x1xf32> to vector<16x32xf32>
    %200 = arith.subf %183, %199 : vector<16x32xf32>
    %cst_78 = arith.constant 9.99999974E-6 : f32
    %201 = vector.broadcast %cst_78 : f32 to vector<16x1xf32>
    %202 = arith.addf %198, %201 : vector<16x1xf32>
    %203 = math.rsqrt %202 : vector<16x1xf32>
    %204 = vector.broadcast %203 : vector<16x1xf32> to vector<16x32xf32>
    %205 = arith.mulf %200, %204 : vector<16x32xf32>
    %206 = vector.broadcast %185 : vector<1x32xf32> to vector<16x32xf32>
    %207 = arith.mulf %205, %206 : vector<16x32xf32>
    %208 = vector.broadcast %187 : vector<1x32xf32> to vector<16x32xf32>
    %209 = arith.addf %207, %208 : vector<16x32xf32>
    %c1_79 = arith.constant 1 : index
    %c0_80 = arith.constant 0 : index
    %c0_81 = arith.constant 0 : index
    %210 = vector.load %arg5[%c1_79, %c0_80, %c0_81] : memref<2x32x96xf32, #tpu.memory_space<vmem>>, vector<1x32x96xf32>
    %211 = vector.shape_cast %210 : vector<1x32x96xf32> to vector<32x96xf32>
    %cst_82 = arith.constant dense<0.000000e+00> : vector<16x96xf32>
    %212 = tpu.matmul %209, %211, %cst_82 {dimension_numbers = #tpu.dot_dimension_numbers<[1], [0], [0], [1], [0, 0, 1, 1], [], []>} : vector<16x32xf32>, vector<32x96xf32>, vector<16x96xf32> -> vector<16x96xf32>
    %213 = vector.extract_strided_slice %212 {offsets = [0, 0], sizes = [16, 32], strides = [1, 1]} : vector<16x96xf32> to vector<16x32xf32>
    %214 = vector.extract_strided_slice %212 {offsets = [0, 32], sizes = [16, 32], strides = [1, 1]} : vector<16x96xf32> to vector<16x32xf32>
    %215 = vector.extract_strided_slice %212 {offsets = [0, 64], sizes = [16, 32], strides = [1, 1]} : vector<16x96xf32> to vector<16x32xf32>
    %c1_83 = arith.constant 1 : index
    %c0_84 = arith.constant 0 : index
    %c0_85 = arith.constant 0 : index
    %c0_86 = arith.constant 0 : index
    %216 = vector.load %arg6[%c1_83, %c0_84, %c0_85, %c0_86] : memref<2x4x8x32xf32, #tpu.memory_space<vmem>>, vector<1x4x8x32xf32>
    %217 = vector.shape_cast %216 : vector<1x4x8x32xf32> to vector<4x8x32xf32>
    %218 = vector.extract_strided_slice %213 {offsets = [0, 0], sizes = [8, 8], strides = [1, 1]} : vector<16x32xf32> to vector<8x8xf32>
    %219 = vector.extract_strided_slice %213 {offsets = [0, 8], sizes = [8, 8], strides = [1, 1]} : vector<16x32xf32> to vector<8x8xf32>
    %220 = vector.extract_strided_slice %213 {offsets = [0, 16], sizes = [8, 8], strides = [1, 1]} : vector<16x32xf32> to vector<8x8xf32>
    %221 = vector.extract_strided_slice %213 {offsets = [0, 24], sizes = [8, 8], strides = [1, 1]} : vector<16x32xf32> to vector<8x8xf32>
    %222 = vector.shape_cast %218 : vector<8x8xf32> to vector<1x8x8xf32>
    %223 = vector.shape_cast %219 : vector<8x8xf32> to vector<1x8x8xf32>
    %224 = vector.shape_cast %220 : vector<8x8xf32> to vector<1x8x8xf32>
    %225 = vector.shape_cast %221 : vector<8x8xf32> to vector<1x8x8xf32>
    %226 = tpu.concatenate %222, %223, %224, %225 in 0 : vector<1x8x8xf32>, vector<1x8x8xf32>, vector<1x8x8xf32>, vector<1x8x8xf32> -> vector<4x8x8xf32>
    %227 = vector.extract_strided_slice %214 {offsets = [0, 0], sizes = [8, 8], strides = [1, 1]} : vector<16x32xf32> to vector<8x8xf32>
    %228 = vector.extract_strided_slice %214 {offsets = [0, 8], sizes = [8, 8], strides = [1, 1]} : vector<16x32xf32> to vector<8x8xf32>
    %229 = vector.extract_strided_slice %214 {offsets = [0, 16], sizes = [8, 8], strides = [1, 1]} : vector<16x32xf32> to vector<8x8xf32>
    %230 = vector.extract_strided_slice %214 {offsets = [0, 24], sizes = [8, 8], strides = [1, 1]} : vector<16x32xf32> to vector<8x8xf32>
    %231 = vector.shape_cast %227 : vector<8x8xf32> to vector<1x8x8xf32>
    %232 = vector.shape_cast %228 : vector<8x8xf32> to vector<1x8x8xf32>
    %233 = vector.shape_cast %229 : vector<8x8xf32> to vector<1x8x8xf32>
    %234 = vector.shape_cast %230 : vector<8x8xf32> to vector<1x8x8xf32>
    %235 = tpu.concatenate %231, %232, %233, %234 in 0 : vector<1x8x8xf32>, vector<1x8x8xf32>, vector<1x8x8xf32>, vector<1x8x8xf32> -> vector<4x8x8xf32>
    %236 = vector.extract_strided_slice %215 {offsets = [0, 0], sizes = [8, 8], strides = [1, 1]} : vector<16x32xf32> to vector<8x8xf32>
    %237 = vector.extract_strided_slice %215 {offsets = [0, 8], sizes = [8, 8], strides = [1, 1]} : vector<16x32xf32> to vector<8x8xf32>
    %238 = vector.extract_strided_slice %215 {offsets = [0, 16], sizes = [8, 8], strides = [1, 1]} : vector<16x32xf32> to vector<8x8xf32>
    %239 = vector.extract_strided_slice %215 {offsets = [0, 24], sizes = [8, 8], strides = [1, 1]} : vector<16x32xf32> to vector<8x8xf32>
    %240 = vector.shape_cast %236 : vector<8x8xf32> to vector<1x8x8xf32>
    %241 = vector.shape_cast %237 : vector<8x8xf32> to vector<1x8x8xf32>
    %242 = vector.shape_cast %238 : vector<8x8xf32> to vector<1x8x8xf32>
    %243 = vector.shape_cast %239 : vector<8x8xf32> to vector<1x8x8xf32>
    %244 = tpu.concatenate %240, %241, %242, %243 in 0 : vector<1x8x8xf32>, vector<1x8x8xf32>, vector<1x8x8xf32>, vector<1x8x8xf32> -> vector<4x8x8xf32>
    %cst_87 = arith.constant dense<0.000000e+00> : vector<4x8x8xf32>
    %245 = tpu.matmul %226, %235, %cst_87 {dimension_numbers = #tpu.dot_dimension_numbers<[2], [2], [1], [1], [0, 0, 0, 1, 1, 1], [0], [0]>} : vector<4x8x8xf32>, vector<4x8x8xf32>, vector<4x8x8xf32> -> vector<4x8x8xf32>
    %cst_88 = arith.constant 0.353553385 : f32
    %246 = vector.broadcast %cst_88 : f32 to vector<4x8x8xf32>
    %247 = arith.mulf %245, %246 : vector<4x8x8xf32>
    %cst_89 = arith.constant dense<0xFF800000> : vector<4x8xf32>
    %248 = vector.multi_reduction <maximumf>, %247, %cst_89 [2] : vector<4x8x8xf32> to vector<4x8xf32>
    %249 = vector.shape_cast %248 : vector<4x8xf32> to vector<4x8x1xf32>
    %250 = vector.broadcast %249 : vector<4x8x1xf32> to vector<4x8x8xf32>
    %251 = arith.subf %247, %250 : vector<4x8x8xf32>
    %252 = math.exp %251 : vector<4x8x8xf32>
    %cst_90 = arith.constant dense<0.000000e+00> : vector<4x8xf32>
    %253 = vector.multi_reduction <add>, %252, %cst_90 [2] : vector<4x8x8xf32> to vector<4x8xf32>
    %254 = vector.shape_cast %253 : vector<4x8xf32> to vector<4x8x1xf32>
    %255 = tpu.reciprocal %254 {approx = true} : vector<4x8x1xf32> -> vector<4x8x1xf32>
    %256 = vector.broadcast %255 : vector<4x8x1xf32> to vector<4x8x8xf32>
    %257 = arith.mulf %252, %256 : vector<4x8x8xf32>
    %cst_91 = arith.constant dense<0.000000e+00> : vector<4x8x8xf32>
    %258 = tpu.matmul %257, %244, %cst_91 {dimension_numbers = #tpu.dot_dimension_numbers<[2], [1], [1], [2], [0, 0, 0, 1, 1, 2], [0], [0]>} : vector<4x8x8xf32>, vector<4x8x8xf32>, vector<4x8x8xf32> -> vector<4x8x8xf32>
    %cst_92 = arith.constant dense<0.000000e+00> : vector<4x8x32xf32>
    %259 = tpu.matmul %258, %217, %cst_92 {dimension_numbers = #tpu.dot_dimension_numbers<[2], [1], [1], [2], [0, 0, 0, 1, 1, 2], [0], [0]>} : vector<4x8x8xf32>, vector<4x8x32xf32>, vector<4x8x32xf32> -> vector<4x8x32xf32>
    %cst_93 = arith.constant dense<0.000000e+00> : vector<8x32xf32>
    %260 = vector.multi_reduction <add>, %259, %cst_93 [0] : vector<4x8x32xf32> to vector<8x32xf32>
    %261 = vector.extract_strided_slice %213 {offsets = [8, 0], sizes = [8, 8], strides = [1, 1]} : vector<16x32xf32> to vector<8x8xf32>
    %262 = vector.extract_strided_slice %213 {offsets = [8, 8], sizes = [8, 8], strides = [1, 1]} : vector<16x32xf32> to vector<8x8xf32>
    %263 = vector.extract_strided_slice %213 {offsets = [8, 16], sizes = [8, 8], strides = [1, 1]} : vector<16x32xf32> to vector<8x8xf32>
    %264 = vector.extract_strided_slice %213 {offsets = [8, 24], sizes = [8, 8], strides = [1, 1]} : vector<16x32xf32> to vector<8x8xf32>
    %265 = vector.shape_cast %261 : vector<8x8xf32> to vector<1x8x8xf32>
    %266 = vector.shape_cast %262 : vector<8x8xf32> to vector<1x8x8xf32>
    %267 = vector.shape_cast %263 : vector<8x8xf32> to vector<1x8x8xf32>
    %268 = vector.shape_cast %264 : vector<8x8xf32> to vector<1x8x8xf32>
    %269 = tpu.concatenate %265, %266, %267, %268 in 0 : vector<1x8x8xf32>, vector<1x8x8xf32>, vector<1x8x8xf32>, vector<1x8x8xf32> -> vector<4x8x8xf32>
    %270 = vector.extract_strided_slice %214 {offsets = [8, 0], sizes = [8, 8], strides = [1, 1]} : vector<16x32xf32> to vector<8x8xf32>
    %271 = vector.extract_strided_slice %214 {offsets = [8, 8], sizes = [8, 8], strides = [1, 1]} : vector<16x32xf32> to vector<8x8xf32>
    %272 = vector.extract_strided_slice %214 {offsets = [8, 16], sizes = [8, 8], strides = [1, 1]} : vector<16x32xf32> to vector<8x8xf32>
    %273 = vector.extract_strided_slice %214 {offsets = [8, 24], sizes = [8, 8], strides = [1, 1]} : vector<16x32xf32> to vector<8x8xf32>
    %274 = vector.shape_cast %270 : vector<8x8xf32> to vector<1x8x8xf32>
    %275 = vector.shape_cast %271 : vector<8x8xf32> to vector<1x8x8xf32>
    %276 = vector.shape_cast %272 : vector<8x8xf32> to vector<1x8x8xf32>
    %277 = vector.shape_cast %273 : vector<8x8xf32> to vector<1x8x8xf32>
    %278 = tpu.concatenate %274, %275, %276, %277 in 0 : vector<1x8x8xf32>, vector<1x8x8xf32>, vector<1x8x8xf32>, vector<1x8x8xf32> -> vector<4x8x8xf32>
    %279 = vector.extract_strided_slice %215 {offsets = [8, 0], sizes = [8, 8], strides = [1, 1]} : vector<16x32xf32> to vector<8x8xf32>
    %280 = vector.extract_strided_slice %215 {offsets = [8, 8], sizes = [8, 8], strides = [1, 1]} : vector<16x32xf32> to vector<8x8xf32>
    %281 = vector.extract_strided_slice %215 {offsets = [8, 16], sizes = [8, 8], strides = [1, 1]} : vector<16x32xf32> to vector<8x8xf32>
    %282 = vector.extract_strided_slice %215 {offsets = [8, 24], sizes = [8, 8], strides = [1, 1]} : vector<16x32xf32> to vector<8x8xf32>
    %283 = vector.shape_cast %279 : vector<8x8xf32> to vector<1x8x8xf32>
    %284 = vector.shape_cast %280 : vector<8x8xf32> to vector<1x8x8xf32>
    %285 = vector.shape_cast %281 : vector<8x8xf32> to vector<1x8x8xf32>
    %286 = vector.shape_cast %282 : vector<8x8xf32> to vector<1x8x8xf32>
    %287 = tpu.concatenate %283, %284, %285, %286 in 0 : vector<1x8x8xf32>, vector<1x8x8xf32>, vector<1x8x8xf32>, vector<1x8x8xf32> -> vector<4x8x8xf32>
    %cst_94 = arith.constant dense<0.000000e+00> : vector<4x8x8xf32>
    %288 = tpu.matmul %269, %278, %cst_94 {dimension_numbers = #tpu.dot_dimension_numbers<[2], [2], [1], [1], [0, 0, 0, 1, 1, 1], [0], [0]>} : vector<4x8x8xf32>, vector<4x8x8xf32>, vector<4x8x8xf32> -> vector<4x8x8xf32>
    %cst_95 = arith.constant 0.353553385 : f32
    %289 = vector.broadcast %cst_95 : f32 to vector<4x8x8xf32>
    %290 = arith.mulf %288, %289 : vector<4x8x8xf32>
    %cst_96 = arith.constant dense<0xFF800000> : vector<4x8xf32>
    %291 = vector.multi_reduction <maximumf>, %290, %cst_96 [2] : vector<4x8x8xf32> to vector<4x8xf32>
    %292 = vector.shape_cast %291 : vector<4x8xf32> to vector<4x8x1xf32>
    %293 = vector.broadcast %292 : vector<4x8x1xf32> to vector<4x8x8xf32>
    %294 = arith.subf %290, %293 : vector<4x8x8xf32>
    %295 = math.exp %294 : vector<4x8x8xf32>
    %cst_97 = arith.constant dense<0.000000e+00> : vector<4x8xf32>
    %296 = vector.multi_reduction <add>, %295, %cst_97 [2] : vector<4x8x8xf32> to vector<4x8xf32>
    %297 = vector.shape_cast %296 : vector<4x8xf32> to vector<4x8x1xf32>
    %298 = tpu.reciprocal %297 {approx = true} : vector<4x8x1xf32> -> vector<4x8x1xf32>
    %299 = vector.broadcast %298 : vector<4x8x1xf32> to vector<4x8x8xf32>
    %300 = arith.mulf %295, %299 : vector<4x8x8xf32>
    %cst_98 = arith.constant dense<0.000000e+00> : vector<4x8x8xf32>
    %301 = tpu.matmul %300, %287, %cst_98 {dimension_numbers = #tpu.dot_dimension_numbers<[2], [1], [1], [2], [0, 0, 0, 1, 1, 2], [0], [0]>} : vector<4x8x8xf32>, vector<4x8x8xf32>, vector<4x8x8xf32> -> vector<4x8x8xf32>
    %cst_99 = arith.constant dense<0.000000e+00> : vector<4x8x32xf32>
    %302 = tpu.matmul %301, %217, %cst_99 {dimension_numbers = #tpu.dot_dimension_numbers<[2], [1], [1], [2], [0, 0, 0, 1, 1, 2], [0], [0]>} : vector<4x8x8xf32>, vector<4x8x32xf32>, vector<4x8x32xf32> -> vector<4x8x32xf32>
    %cst_100 = arith.constant dense<0.000000e+00> : vector<8x32xf32>
    %303 = vector.multi_reduction <add>, %302, %cst_100 [0] : vector<4x8x32xf32> to vector<8x32xf32>
    %304 = tpu.concatenate %260, %303 in 0 : vector<8x32xf32>, vector<8x32xf32> -> vector<16x32xf32>
    %c1_101 = arith.constant 1 : index
    %c0_102 = arith.constant 0 : index
    %c0_103 = arith.constant 0 : index
    %305 = vector.load %arg7[%c1_101, %c0_102, %c0_103] : memref<2x1x32xf32, #tpu.memory_space<vmem>>, vector<1x1x32xf32>
    %306 = vector.shape_cast %305 : vector<1x1x32xf32> to vector<1x32xf32>
    %307 = vector.broadcast %306 : vector<1x32xf32> to vector<16x32xf32>
    %308 = arith.addf %304, %307 : vector<16x32xf32>
    %309 = arith.addf %183, %308 : vector<16x32xf32>
    %c1_104 = arith.constant 1 : index
    %c0_105 = arith.constant 0 : index
    %c0_106 = arith.constant 0 : index
    %310 = vector.load %arg8[%c1_104, %c0_105, %c0_106] : memref<2x1x32xf32, #tpu.memory_space<vmem>>, vector<1x1x32xf32>
    %311 = vector.shape_cast %310 : vector<1x1x32xf32> to vector<1x32xf32>
    %c1_107 = arith.constant 1 : index
    %c0_108 = arith.constant 0 : index
    %c0_109 = arith.constant 0 : index
    %312 = vector.load %arg9[%c1_107, %c0_108, %c0_109] : memref<2x1x32xf32, #tpu.memory_space<vmem>>, vector<1x1x32xf32>
    %313 = vector.shape_cast %312 : vector<1x1x32xf32> to vector<1x32xf32>
    %cst_110 = arith.constant dense<0.000000e+00> : vector<16xf32>
    %314 = vector.multi_reduction <add>, %309, %cst_110 [1] : vector<16x32xf32> to vector<16xf32>
    %315 = vector.shape_cast %314 : vector<16xf32> to vector<16x1xf32>
    %cst_111 = arith.constant 3.200000e+01 : f32
    %316 = vector.broadcast %cst_111 : f32 to vector<16x1xf32>
    %317 = arith.divf %315, %316 : vector<16x1xf32>
    %318 = vector.broadcast %317 : vector<16x1xf32> to vector<16x32xf32>
    %319 = arith.subf %309, %318 : vector<16x32xf32>
    %320 = arith.mulf %319, %319 : vector<16x32xf32>
    %cst_112 = arith.constant dense<0.000000e+00> : vector<16xf32>
    %321 = vector.multi_reduction <add>, %320, %cst_112 [1] : vector<16x32xf32> to vector<16xf32>
    %322 = vector.shape_cast %321 : vector<16xf32> to vector<16x1xf32>
    %cst_113 = arith.constant 3.200000e+01 : f32
    %323 = vector.broadcast %cst_113 : f32 to vector<16x1xf32>
    %324 = arith.divf %322, %323 : vector<16x1xf32>
    %325 = vector.broadcast %317 : vector<16x1xf32> to vector<16x32xf32>
    %326 = arith.subf %309, %325 : vector<16x32xf32>
    %cst_114 = arith.constant 9.99999974E-6 : f32
    %327 = vector.broadcast %cst_114 : f32 to vector<16x1xf32>
    %328 = arith.addf %324, %327 : vector<16x1xf32>
    %329 = math.rsqrt %328 : vector<16x1xf32>
    %330 = vector.broadcast %329 : vector<16x1xf32> to vector<16x32xf32>
    %331 = arith.mulf %326, %330 : vector<16x32xf32>
    %332 = vector.broadcast %311 : vector<1x32xf32> to vector<16x32xf32>
    %333 = arith.mulf %331, %332 : vector<16x32xf32>
    %334 = vector.broadcast %313 : vector<1x32xf32> to vector<16x32xf32>
    %335 = arith.addf %333, %334 : vector<16x32xf32>
    %c1_115 = arith.constant 1 : index
    %c0_116 = arith.constant 0 : index
    %c0_117 = arith.constant 0 : index
    %336 = vector.load %arg10[%c1_115, %c0_116, %c0_117] : memref<2x32x256xf32, #tpu.memory_space<vmem>>, vector<1x32x256xf32>
    %337 = vector.shape_cast %336 : vector<1x32x256xf32> to vector<32x256xf32>
    %cst_118 = arith.constant dense<0.000000e+00> : vector<16x256xf32>
    %338 = tpu.matmul %335, %337, %cst_118 {dimension_numbers = #tpu.dot_dimension_numbers<[1], [0], [0], [1], [0, 0, 1, 1], [], []>} : vector<16x32xf32>, vector<32x256xf32>, vector<16x256xf32> -> vector<16x256xf32>
    %c1_119 = arith.constant 1 : index
    %c0_120 = arith.constant 0 : index
    %c0_121 = arith.constant 0 : index
    %339 = vector.load %arg11[%c1_119, %c0_120, %c0_121] : memref<2x1x256xf32, #tpu.memory_space<vmem>>, vector<1x1x256xf32>
    %340 = vector.shape_cast %339 : vector<1x1x256xf32> to vector<1x256xf32>
    %341 = vector.broadcast %340 : vector<1x256xf32> to vector<16x256xf32>
    %342 = arith.addf %338, %341 : vector<16x256xf32>
    %343 = vector.extract_strided_slice %342 {offsets = [0, 0], sizes = [16, 128], strides = [1, 1]} : vector<16x256xf32> to vector<16x128xf32>
    %344 = vector.extract_strided_slice %342 {offsets = [0, 128], sizes = [16, 128], strides = [1, 1]} : vector<16x256xf32> to vector<16x128xf32>
    %cst_122 = arith.constant 5.000000e-01 : f32
    %345 = vector.broadcast %cst_122 : f32 to vector<16x128xf32>
    %346 = arith.mulf %345, %344 : vector<16x128xf32>
    %cst_123 = arith.constant 0.707106769 : f32
    %347 = vector.broadcast %cst_123 : f32 to vector<16x128xf32>
    %348 = arith.mulf %344, %347 : vector<16x128xf32>
    %349 = math.erf %348 : vector<16x128xf32>
    %cst_124 = arith.constant 1.000000e+00 : f32
    %350 = vector.broadcast %cst_124 : f32 to vector<16x128xf32>
    %351 = arith.addf %350, %349 : vector<16x128xf32>
    %352 = arith.mulf %346, %351 : vector<16x128xf32>
    %353 = arith.mulf %343, %352 : vector<16x128xf32>
    %c1_125 = arith.constant 1 : index
    %c0_126 = arith.constant 0 : index
    %c0_127 = arith.constant 0 : index
    %354 = vector.load %arg12[%c1_125, %c0_126, %c0_127] : memref<2x128x32xf32, #tpu.memory_space<vmem>>, vector<1x128x32xf32>
    %355 = vector.shape_cast %354 : vector<1x128x32xf32> to vector<128x32xf32>
    %cst_128 = arith.constant dense<0.000000e+00> : vector<16x32xf32>
    %356 = tpu.matmul %353, %355, %cst_128 {dimension_numbers = #tpu.dot_dimension_numbers<[1], [0], [0], [1], [0, 0, 1, 1], [], []>} : vector<16x128xf32>, vector<128x32xf32>, vector<16x32xf32> -> vector<16x32xf32>
    %c1_129 = arith.constant 1 : index
    %c0_130 = arith.constant 0 : index
    %c0_131 = arith.constant 0 : index
    %357 = vector.load %arg13[%c1_129, %c0_130, %c0_131] : memref<2x1x32xf32, #tpu.memory_space<vmem>>, vector<1x1x32xf32>
    %358 = vector.shape_cast %357 : vector<1x1x32xf32> to vector<1x32xf32>
    %359 = vector.broadcast %358 : vector<1x32xf32> to vector<16x32xf32>
    %360 = arith.addf %356, %359 : vector<16x32xf32>
    %361 = arith.addf %309, %360 : vector<16x32xf32>
    %c0_132 = arith.constant 0 : index
    %c0_133 = arith.constant 0 : index
    %362 = vector.load %arg14[%c0_132, %c0_133] : memref<16x32xf32, #tpu.memory_space<vmem>>, vector<16x32xf32>
    tpu.vector_store %arg14[%c0_132, %c0_133], %361 {strides = array<i32>} : memref<16x32xf32, #tpu.memory_space<vmem>>, vector<16x32xf32>,
    return
  }
}

</mosaic_0001>

<bundles_post_ra>
// kernel: tpu_custom_call.1
= control target key start
LH: loop header
LB: loop body
LE: loop exit
PB: predicated region body
PF: predicated region fallthrough
CT: control target
= control target key end

     0   :  { %vm56_vm0 = vcmask 130048   ;;  %s3324_s0 = inlined_call_operand.vmem [shape: f32[16,16], index: 0, kind: input, shape index: {}]   ;;  %s3325_s1 = inlined_call_operand.vmem [shape: f32[16,32], index: 1, kind: input, shape index: {}]   ;;  %s3326_s2 = inlined_call_operand.vmem [shape: f32[1,32], index: 2, kind: input, shape index: {}]   ;;  %s3327_s3 = inlined_call_operand.vmem [shape: f32[2,1,32], index: 3, kind: input, shape index: {}]   ;;  %s3328_s4 = inlined_call_operand.vmem [shape: f32[2,1,32], index: 4, kind: input, shape index: {}]   ;;  %s3329_s5 = inlined_call_operand.vmem [shape: f32[2,32,96], index: 5, kind: input, shape index: {}]   ;;  %s3330_s6 = inlined_call_operand.vmem [shape: f32[2,4,8,32], index: 6, kind: input, shape index: {}]   ;;  %s3331_s7 = inlined_call_operand.vmem [shape: f32[2,1,32], index: 7, kind: input, shape index: {}]   ;;  %s3332_s8 = inlined_call_operand.vmem [shape: f32[2,1,32], index: 8, kind: input, shape index: {}]   ;;  %s3333_s9 = inlined_call_operand.vmem [shape: f32[2,1,32], index: 9, kind: input, shape index: {}]   ;;  %s3334_s10 = inlined_call_operand.vmem [shape: f32[2,32,256], index: 10, kind: input, shape index: {}]   ;;  %s3335_s11 = inlined_call_operand.vmem [shape: f32[2,1,256], index: 11, kind: input, shape index: {}]   ;;  %s3336_s12 = inlined_call_operand.vmem [shape: f32[2,128,32], index: 12, kind: input, shape index: {}]   ;;  %s3337_s13 = inlined_call_operand.vmem [shape: f32[2,1,32], index: 13, kind: input, shape index: {}]   ;;  %s3338_s14 = inlined_call_operand.hbm [shape: f32[16,32], index: 14, kind: output, shape index: {}]  }
   0x1   :  { %v51_v0 = vld [vmem:[%s3325_s1 + $0x8] sm:$0xff]  ;;  %v50_v1 = vld [vmem:[%s3325_s1] sm:$0xff] }
   0x2   :  { %77 = vmatpush.msra.mxu0 %v51_v0  ;;  %v48_v2 = vld [vmem:[%s3324_s0] sm:$0xff] }
   0x4   :  { %78 = vmatpush.msra.mxu0 %v50_v1 }
   0x5   :  { %2290 = vmatmul.msk.f32.vlgmr.msra.gmra.mxu0 %vm56_vm0, %v48_v2 }
   0x6   :  { %19 = vsyncpa [#allocation3], 0  ;;  %v2671_v3 = vld [vmem:[%s3326_s2] ss:$0 sm:$0xff]  ;;  %vm88_vm1 = vcmask 261120   ;;  %v2574_v7 = vmov 32.0  }
   0x7   :  { %2458 = vrcp.f32 %v2574_v7  ;;  %v153_v19 = vld [vmem:[%s3329_s5 + $0x18] sm:$0xff]  ;;  %v152_v20 = vld [vmem:[%s3329_s5 + $0x10] sm:$0xff]  ;;  %v151_v21 = vld [vmem:[%s3329_s5 + $0x8] sm:$0xff]  ;;  %s2575_s17 = smov 104   ;;  %s2576_s18 = smov 120   ;;  %vm196_vm6 = vcmask 64512  }
   0x8   :  { %172 = vmatpush.msra.mxu1 %v153_v19  ;;  %v150_v22 = vld [vmem:[%s3329_s5] sm:$0xff]  ;;  %v49_v38 = vld [vmem:[%s3324_s0 + $0x8] sm:$0xff]  ;;  %s2577_s19 = smov 96   ;;  %s2578_s20 = smov 112  }
   0x9   :  { %v2699_v32 = vld [vmem:[%s3327_s3] ss:$0 sm:$0xff]  ;;  %s2579_s0 = smov 64   ;;  %s2581_s30 = smov 128  }
   0xa   :  { %173 = vmatpush.msra.mxu1 %v152_v20  ;;  %v2704_v35 = vld [vmem:[%s3328_s4] ss:$0 sm:$0xff]  ;;  %s2582_s15 = smov 8  }
   0xc   :  { %174 = vmatpush.msra.mxu1 %v151_v21 }
   0xd   :  { %v2459_v8 = vpop.eup %2458  ;;  %2291 = vmatmul.msk.f32.gmra.mxu0 %vm56_vm0, %v49_v38 }
   0xe   :  { %v96_v9 = vmul.f32 32.0, %v2459_v8  ;;  %vm100_vm2 = vweird.f32 %v2459_v8  ;;  %175 = vmatpush.msra.mxu1 %v150_v22 }
  0x10   :  { %v97_v10 = vsub.f32 1.0, %v96_v9 }
  0x12   :  { %v98_v11 = vmul.f32 %v2459_v8, %v97_v10 }
  0x14   :  { %v99_v12 = vadd.f32 %v2459_v8, %v98_v11 }
  0x16   :  { %v2678_v13 = vsel %vm100_vm2, %v2459_v8, %v99_v12 }
  0x82   :  { %v80_v4 = vpop.f32.mrf.mxu0 }
  0x83   :  { %v2674_v5 = vadd.f32 %v2671_v3, %v80_v4 }
  0x85   :  { %v89_v6 = vsel %vm88_vm1, %v2674_v5, 0.0 }
  0x86   :  { %90 = vadd.xlane.f32.xlu0 %v89_v6 }
  0x8a   :  { %v83_v44 = vpop.f32.mrf.mxu0 }
  0x8b   :  { %v2733_v45 = vadd.f32 %v2671_v3, %v83_v44 }
  0x8d   :  { %v92_v46 = vsel %vm88_vm1, %v2733_v45, 0.0 }
  0xf9   :  { %v91_v14 = vpop.xlane.xlu0 %90 }
  0xfa   :  { %v102_v15 = vmul.f32 %v2678_v13, %v91_v14 }
  0xfc   :  { %v104_v16 = vsub.f32 %v2674_v5, %v102_v15 }
  0xfe   :  { %v106_v17 = vmul.f32 %v104_v16, %v104_v16 }
 0x100   :  { %v108_v18 = vsel %vm88_vm1, %v106_v17, 0.0 }
 0x101   :  { %109 = vadd.xlane.f32.xlu0 %v108_v18 }
 0x174   :  { %v110_v23 = vpop.xlane.xlu0 %109 }
 0x175   :  { %v114_v24 = vmul.f32 %v110_v23, %v2678_v13 }
 0x177   :  { %v116_v25 = vadd.f32 1e-05, %v114_v24 }
 0x179   :  { %2460 = vrsqrt.f32 %v116_v25  ;;  %vm124_vm4 = vweird.f32 %v116_v25 }
 0x17f   :  { %v2461_v26 = vpop.eup %2460 }
 0x180   :  { %v119_v27 = vmul.f32 %v2461_v26, %v116_v25  ;;  %vm125_vm3 = vweird.f32 %v2461_v26 }
 0x181   :  { %vm126_vm5 = vmor %vm124_vm4, %vm125_vm3 }
 0x182   :  { %v120_v28 = vmul.f32 %v2461_v26, %v119_v27 }
 0x184   :  { %v121_v29 = vmul.f32 0.5, %v120_v28 }
 0x186   :  { %v122_v30 = vsub.f32 1.5, %v121_v29 }
 0x188   :  { %v123_v31 = vmul.f32 %v2461_v26, %v122_v30 }
 0x18a   :  { %v127_v33 = vsel %vm126_vm5, %v2461_v26, %v123_v31 }
 0x18b   :  { %v138_v34 = vmul.f32 %v127_v33, %v104_v16 }
 0x18d   :  { %v143_v36 = vmul.f32 %v2699_v32, %v138_v34 }
 0x18f   :  { %v148_v37 = vadd.f32 %v2704_v35, %v143_v36 }
 0x191   :  { %2292 = vmatmul.msk.f32.vlgmr.msra.gmra.mxu1 %vm88_vm1, %v148_v37 }
 0x20e   :  { %v2713_v39 = vpop.f32.mrf.mxu1 }
 0x20f   :  { %192 = vrot.lane.b32.xlu2 %v2713_v39, %s2575_s17  ;;  %188 = vrot.lane.b32.xlu1 %v2713_v39, %s2576_s18 }
 0x217   :  { %194 = vrot.lane.b32.xlu2 %v2713_v39, %s2577_s19  ;;  %190 = vrot.lane.b32.xlu1 %v2713_v39, %s2578_s20 }
 0x269   :  { %v2723_v40 = vpop.permute.xlu2 %192 }
 0x26a   :  { %273 = vrot.lane.b32.xlu2 %v2723_v40, %s2577_s19 }
 0x271   :  { %v195_v41 = vpop.permute.xlu2 %194 }
 0x272   :  { %2294 = vmatpush.xpose.msk.msra.mxu3 %vm196_vm6, %v195_v41 }
 0x275   :  { %2295 = vmatmul.msk.f32.vlgmr.msra.gmra.mxu3 %vm196_vm6, %v2713_v39 }
 0x281   :  { %v189_v42 = vpop.permute.xlu1 %188 }
 0x282   :  { %221 = vrot.lane.b32.xlu0 %v189_v42, %s2577_s19 }
 0x289   :  { %v191_v43 = vpop.permute.xlu1 %190 }
 0x28a   :  { %247 = vrot.lane.b32.xlu1 %v191_v43, %s2577_s19  ;;  %v2420_v11 = vpack.i.bf16 %v191_v43, %v189_v42 }
 0x2b4   :  { %93 = vadd.xlane.f32.xlu1 %v92_v46 }
 0x2c4   :  { %v274_v48 = vpop.permute.xlu2 %273 }
 0x2f4   :  { %v222_v47 = vpop.permute.xlu0 %221 }
 0x2f5   :  { %2296 = vmatpush.xpose.msk.msrb.mxu3 %vm196_vm6, %v222_v47 }
 0x2f8   :  { %v218_v49 = vpop.f32.mrf.mxu3  ;;  %2297 = vmatmul.msk.f32.vlgmr.msrb.gmra.mxu3 %vm196_vm6, %v189_v42 }
 0x2f9   :  { %2300 = vmatpush.xpose.msk.msra.mxu3 %vm196_vm6, %v274_v48  ;;  %v299_v50 = vmul.f32 0.35355338, %v218_v49 }
 0x2fb   :  { %v303_v51 = vsel %vm196_vm6, %v299_v50, -inf }
 0x2fc   :  { %304 = vmax.xlane.f32.xlu1 %v303_v51  ;;  %v248_v52 = vpop.permute.xlu1 %247 }
 0x2fd   :  { %2298 = vmatpush.xpose.msk.msra.mxu2 %vm196_vm6, %v248_v52 }
 0x300   :  { %2299 = vmatmul.msk.f32.vlgmr.msra.gmra.mxu2 %vm196_vm6, %v191_v43  ;;  %2301 = vmatmul.msk.f32.vlgmr.msra.gmra.mxu3 %vm196_vm6, %v2723_v40 }
 0x327   :  { %v94_v53 = vpop.xlane.xlu1 %93 }
 0x328   :  { %v103_v54 = vmul.f32 %v2678_v13, %v94_v53 }
 0x32a   :  { %v105_v55 = vsub.f32 %v2733_v45, %v103_v54 }
 0x32c   :  { %v107_v56 = vmul.f32 %v105_v55, %v105_v55 }
 0x32e   :  { %v111_v57 = vsel %vm88_vm1, %v107_v56, 0.0 }
 0x32f   :  { %112 = vadd.xlane.f32.xlu2 %v111_v57 }
 0x36f   :  { %v305_v58 = vpop.xlane.xlu1 %304 }
 0x370   :  { %v315_v59 = vsub.f32 %v299_v50, %v305_v58  ;;  %v2784_v58 = vld [vmem:[%s3330_s6] sm:$0xff] }
 0x372   :  { %v319_v60 = vmul.f32 1.442695, %v315_v59 }
 0x374   :  { %2462 = vpow2.f32 %v319_v60 }
 0x37a   :  { %v2748_v61 = vpop.eup %2462 }
 0x37b   :  { %v244_v62 = vpop.f32.mrf.mxu3  ;;  %v327_v63 = vsel %vm196_vm6, %v2748_v61, 0.0 }
 0x37c   :  { %v300_v0 = vmul.f32 0.35355338, %v244_v62  ;;  %328 = vadd.xlane.f32.xlu1 %v327_v63  ;;  %v2798_v63 = vld [vmem:[%s3330_s6 + $0x10] sm:$0xff] }
 0x37e   :  { %v306_v1 = vsel %vm196_vm6, %v300_v0, -inf }
 0x37f   :  { %307 = vmax.xlane.f32.xlu0 %v306_v1  ;;  %v2810_v1 = vld [vmem:[%s3330_s6 + $0x18] sm:$0xff] }
 0x383   :  { %v270_v2 = vpop.f32.mrf.mxu2  ;;  %v296_v6 = vpop.f32.mrf.mxu3 }
 0x384   :  { %v301_v3 = vmul.f32 0.35355338, %v270_v2  ;;  %v302_v7 = vmul.f32 0.35355338, %v296_v6 }
 0x386   :  { %v309_v4 = vsel %vm196_vm6, %v301_v3, -inf  ;;  %v312_v8 = vsel %vm196_vm6, %v302_v7, -inf }
 0x387   :  { %310 = vmax.xlane.f32.xlu2 %v309_v4 }
 0x38f   :  { %313 = vmax.xlane.f32.xlu2 %v312_v8 }
 0x3a2   :  { %v113_v9 = vpop.xlane.xlu2 %112 }
 0x3a3   :  { %v115_v10 = vmul.f32 %v113_v9, %v2678_v13 }
 0x3a5   :  { %v117_v12 = vadd.f32 1e-05, %v115_v10 }
 0x3a7   :  { %2464 = vrsqrt.f32 %v117_v12  ;;  %2421 = vrot.lane.b32.xlu2 %v2420_v11, %s2579_s0  ;;  %vm134_vm8 = vweird.f32 %v117_v12 }
 0x3ad   :  { %v2465_v14 = vpop.eup %2464 }
 0x3ae   :  { %v129_v15 = vmul.f32 %v2465_v14, %v117_v12  ;;  %vm135_vm7 = vweird.f32 %v2465_v14 }
 0x3af   :  { %vm136_vm9 = vmor %vm134_vm8, %vm135_vm7 }
 0x3b0   :  { %v130_v16 = vmul.f32 %v2465_v14, %v129_v15 }
 0x3b2   :  { %v131_v17 = vmul.f32 0.5, %v130_v16 }
 0x3b4   :  { %v132_v18 = vsub.f32 1.5, %v131_v17 }
 0x3b6   :  { %v133_v19 = vmul.f32 %v2465_v14, %v132_v18 }
 0x3b8   :  { %v137_v20 = vsel %vm136_vm9, %v2465_v14, %v133_v19 }
 0x3b9   :  { %v139_v21 = vmul.f32 %v137_v20, %v105_v55 }
 0x3bb   :  { %v144_v22 = vmul.f32 %v2699_v32, %v139_v21 }
 0x3bd   :  { %v149_v23 = vadd.f32 %v2704_v35, %v144_v22 }
 0x3bf   :  { %2293 = vmatmul.msk.f32.gmra.mxu1 %vm88_vm1, %v149_v23 }
 0x3ef   :  { %v329_v46 = vpop.xlane.xlu1 %328 }
 0x3f2   :  { %v308_v24 = vpop.xlane.xlu0 %307 }
 0x3f3   :  { %v316_v25 = vsub.f32 %v300_v0, %v308_v24  ;;  %v2804_v0 = vld [vmem:[%s3330_s6 + $0x8] sm:$0xff] }
 0x3f5   :  { %v321_v26 = vmul.f32 1.442695, %v316_v25 }
 0x3f7   :  { %2466 = vpow2.f32 %v321_v26 }
 0x3fa   :  { %v311_v27 = vpop.xlane.xlu2 %310 }
 0x3fb   :  { %v317_v28 = vsub.f32 %v301_v3, %v311_v27 }
 0x3fd   :  { %v2467_v29 = vpop.eup %2466  ;;  %v323_v30 = vmul.f32 1.442695, %v317_v28 }
 0x3fe   :  { %v330_v31 = vsel %vm196_vm6, %v2467_v29, 0.0 }
 0x3ff   :  { %2468 = vpow2.f32 %v323_v30  ;;  %331 = vadd.xlane.f32.xlu1 %v330_v31 }
 0x402   :  { %v314_v33 = vpop.xlane.xlu2 %313 }
 0x403   :  { %v318_v34 = vsub.f32 %v302_v7, %v314_v33 }
 0x405   :  { %v2469_v36 = vpop.eup %2468  ;;  %v325_v32 = vmul.f32 1.442695, %v318_v34 }
 0x406   :  { %v333_v35 = vsel %vm196_vm6, %v2469_v36, 0.0 }
 0x407   :  { %2470 = vpow2.f32 %v325_v32  ;;  %334 = vadd.xlane.f32.xlu0 %v333_v35  ;;  %v2838_v32 = vld [vmem:[%s3331_s7] ss:$0 sm:$0xff] }
 0x40a   :  { %v2422_v37 = vpop.permute.xlu2 %2421 }
 0x40b   :  { %v2424_v38 = vunpack.i.h.bf16 %v2422_v37  ;;  %v2423_v41 = vunpack.i.l.bf16 %v2422_v37 }
 0x40d   :  { %v2471_v42 = vpop.eup %2470  ;;  %394 = vmatpush.msrb.mxu2 %v2423_v41  ;;  %420 = vmatpush.msrb.mxu3 %v2424_v38 }
 0x40e   :  { %v336_v43 = vsel %vm196_vm6, %v2471_v42, 0.0 }
 0x40f   :  { %337 = vadd.xlane.f32.xlu0 %v336_v43  ;;  %515 = vmatpush.msra.mxu3 %v2798_v63 }
 0x410   :  { %492 = vmatpush.msra.mxu2 %v2804_v0 }
 0x418   :  { %347 = vrot.lane.b32.xlu1 %v2713_v39, %s2579_s0 }
 0x423   :  { %425 = vrot.lane.b32.xlu0 %v2723_v40, %s2579_s0 }
 0x43c   :  { %v2767_v44 = vpop.f32.mrf.mxu1 }
 0x43d   :  { %551 = vrot.lane.b32.xlu2 %v2767_v44, %s2576_s18  ;;  %555 = vrot.lane.b32.xlu0 %v2767_v44, %s2575_s17 }
 0x445   :  { %553 = vrot.lane.b32.xlu2 %v2767_v44, %s2578_s20  ;;  %557 = vrot.lane.b32.xlu0 %v2767_v44, %s2577_s19 }
 0x472   :  { %v332_v47 = vpop.xlane.xlu1 %331 }
 0x473   :  { %2472 = vrcp.f32 %v332_v47 }
 0x479   :  { %v2473_v39 = vpop.eup %2472 }
 0x47a   :  { %v335_v48 = vpop.xlane.xlu0 %334  ;;  %v344_v40 = vmul.f32 %v2473_v39, %v2467_v29 }
 0x47b   :  { %2474 = vrcp.f32 %v335_v48 }
 0x47c   :  { %2303 = vmatmul.msk.f32.vlgmr.msrb.gmra.mxu2 %vm196_vm6, %v344_v40  ;;  %2476 = vrcp.f32 %v329_v46 }
 0x481   :  { %v2475_v49 = vpop.eup %2474 }
 0x482   :  { %v345_v50 = vmul.f32 %v2475_v49, %v2469_v36  ;;  %v2477_v51 = vpop.eup %2476  ;;  %v338_v52 = vpop.xlane.xlu0 %337 }
 0x483   :  { %v343_v54 = vmul.f32 %v2477_v51, %v2748_v61  ;;  %2478 = vrcp.f32 %v338_v52 }
 0x484   :  { %2304 = vmatmul.msk.f32.vlgmr.msrb.gmra.mxu3 %vm196_vm6, %v345_v50 }
 0x489   :  { %v2479_v55 = vpop.eup %2478 }
 0x48a   :  { %v348_v53 = vpop.permute.xlu1 %347  ;;  %v346_v57 = vmul.f32 %v2479_v55, %v2471_v42 }
 0x48b   :  { %368 = vmatpush.msrb.mxu0 %v348_v53 }
 0x48c   :  { %2302 = vmatmul.msk.f32.vlgmr.msrb.gmra.mxu0 %vm196_vm6, %v343_v54 }
 0x48d   :  { %469 = vmatpush.msra.mxu0 %v2784_v58 }
 0x495   :  { %v426_v56 = vpop.permute.xlu0 %425 }
 0x496   :  { %446 = vmatpush.msrb.mxu1 %v426_v56 }
 0x497   :  { %2305 = vmatmul.msk.f32.vlgmr.msrb.gmra.mxu1 %vm196_vm6, %v346_v57  ;;  %v552_v59 = vpop.permute.xlu2 %551 }
 0x498   :  { %583 = vrot.lane.b32.xlu1 %v552_v59, %s2577_s19  ;;  %538 = vmatpush.msra.mxu1 %v2810_v1 }
 0x49f   :  { %v554_v60 = vpop.permute.xlu2 %553 }
 0x4a0   :  { %609 = vrot.lane.b32.xlu2 %v554_v60, %s2577_s19  ;;  %v2425_v36 = vpack.i.bf16 %v554_v60, %v552_v59 }
 0x4af   :  { %v2790_v61 = vpop.permute.xlu0 %555 }
 0x4b0   :  { %635 = vrot.lane.b32.xlu1 %v2790_v61, %s2577_s19 }
 0x4b7   :  { %v558_v62 = vpop.permute.xlu0 %557 }
 0x4b8   :  { %2310 = vmatpush.xpose.msk.msrb.mxu0 %vm196_vm6, %v558_v62 }
 0x4fa   :  { %v610_v2 = vpop.permute.xlu2 %609 }
 0x4fb   :  { %2314 = vmatpush.xpose.msk.msrb.mxu3 %vm196_vm6, %v610_v2 }
 0x4ff   :  { %v396_v3 = vpop.f32.mrf.mxu2 }
 0x500   :  { %2307 = vmatmul.msk.f32.vlgmr.msra.gmra.mxu2 %vm196_vm6, %v396_v3 }
 0x507   :  { %v422_v4 = vpop.f32.mrf.mxu3 }
 0x508   :  { %2308 = vmatmul.msk.f32.vlgmr.msra.gmra.mxu3 %vm196_vm6, %v422_v4 }
 0x509   :  { %v370_v6 = vpop.f32.mrf.mxu0 }
 0x50a   :  { %2306 = vmatmul.msk.f32.vlgmr.msra.gmra.mxu0 %vm196_vm6, %v370_v6  ;;  %v584_v7 = vpop.permute.xlu1 %583 }
 0x50b   :  { %2312 = vmatpush.xpose.msk.msrb.mxu2 %vm196_vm6, %v584_v7 }
 0x50e   :  { %2313 = vmatmul.msk.f32.vlgmr.msrb.gmra.mxu2 %vm196_vm6, %v552_v59 }
 0x510   :  { %2315 = vmatmul.msk.f32.vlgmr.msrb.gmra.mxu3 %vm196_vm6, %v554_v60 }
 0x512   :  { %2311 = vmatmul.msk.f32.vlgmr.msrb.gmra.mxu0 %vm196_vm6, %v2767_v44 }
 0x514   :  { %v448_v8 = vpop.f32.mrf.mxu1 }
 0x515   :  { %2309 = vmatmul.msk.f32.vlgmr.msra.gmra.mxu1 %vm196_vm6, %v448_v8 }
 0x522   :  { %v636_v9 = vpop.permute.xlu1 %635 }
 0x523   :  { %2316 = vmatpush.xpose.msk.msrb.mxu1 %vm196_vm6, %v636_v9 }
 0x526   :  { %2317 = vmatmul.msk.f32.vlgmr.msrb.gmra.mxu1 %vm196_vm6, %v2790_v61 }
 0x583   :  { %v494_v10 = vpop.f32.mrf.mxu2 }
 0x584   :  { %v544_v12 = vsel %vm88_vm1, %v494_v10, 0.0 }
 0x587   :  { %v471_v11 = vpop.f32.mrf.mxu0 }
 0x588   :  { %v543_v14 = vsel %vm88_vm1, %v471_v11, 0.0 }
 0x589   :  { %v545_v15 = vadd.f32 %v544_v12, %v543_v14 }
 0x58b   :  { %v517_v16 = vpop.f32.mrf.mxu3 }
 0x58c   :  { %v546_v17 = vsel %vm88_vm1, %v517_v16, 0.0 }
 0x58d   :  { %v547_v18 = vadd.f32 %v546_v17, %v545_v15 }
 0x58f   :  { %v580_v19 = vpop.f32.mrf.mxu0 }
 0x590   :  { %v661_v20 = vmul.f32 0.35355338, %v580_v19 }
 0x591   :  { %v606_v21 = vpop.f32.mrf.mxu2 }
 0x592   :  { %v662_v22 = vmul.f32 0.35355338, %v606_v21  ;;  %v540_v23 = vpop.f32.mrf.mxu1  ;;  %v665_v24 = vsel %vm196_vm6, %v661_v20, -inf }
 0x593   :  { %v548_v25 = vsel %vm88_vm1, %v540_v23, 0.0  ;;  %v632_v26 = vpop.f32.mrf.mxu3  ;;  %666 = vmax.xlane.f32.xlu1 %v665_v24  ;;  %v980_v24 = vld [vmem:[%s3334_s10 + $0x20] sm:$0xff] }
 0x594   :  { %v549_v27 = vadd.f32 %v548_v25, %v547_v18  ;;  %v663_v28 = vmul.f32 0.35355338, %v632_v26  ;;  %v668_v29 = vsel %vm196_vm6, %v662_v22, -inf  ;;  %v978_v25 = vld [vmem:[%s3334_s10 + $0x10] sm:$0xff]  ;;  %v976_v26 = vld [vmem:[%s3334_s10] sm:$0xff] }
 0x595   :  { %669 = vmax.xlane.f32.xlu2 %v668_v29 }
 0x596   :  { %v671_v30 = vsel %vm196_vm6, %v663_v28, -inf  ;;  %v916_v35 = vadd.f32 %v2838_v32, %v549_v27 }
 0x597   :  { %672 = vmax.xlane.f32.xlu0 %v671_v30  ;;  %v983_v30 = vld [vmem:[%s3334_s10 + $0x38] sm:$0xff] }
 0x598   :  { %v2842_v37 = vadd.f32 %v916_v35, %v2674_v5 }
 0x59a   :  { %v922_v38 = vsel %vm88_vm1, %v2842_v37, 0.0 }
 0x5a3   :  { %v658_v31 = vpop.f32.mrf.mxu1 }
 0x5a4   :  { %v664_v33 = vmul.f32 0.35355338, %v658_v31  ;;  %v981_v31 = vld [vmem:[%s3334_s10 + $0x28] sm:$0xff] }
 0x5a6   :  { %v674_v34 = vsel %vm196_vm6, %v664_v33, -inf }
 0x5a7   :  { %675 = vmax.xlane.f32.xlu2 %v674_v34 }
 0x5bf   :  { %2426 = vrot.lane.b32.xlu2 %v2425_v36, %s2579_s0  ;;  %v977_v36 = vld [vmem:[%s3334_s10 + $0x8] sm:$0xff] }
 0x5e8   :  { %923 = vadd.xlane.f32.xlu2 %v922_v38 }
 0x606   :  { %v667_v41 = vpop.xlane.xlu1 %666 }
 0x607   :  { %v677_v42 = vsub.f32 %v661_v20, %v667_v41 }
 0x608   :  { %v670_v43 = vpop.xlane.xlu2 %669 }
 0x609   :  { %v681_v46 = vmul.f32 1.442695, %v677_v42  ;;  %v678_v47 = vsub.f32 %v662_v22, %v670_v43  ;;  %v2898_v42 = vld [vmem:[%s3332_s8] ss:$0 sm:$0xff] }
 0x60a   :  { %v673_v50 = vpop.xlane.xlu0 %672 }
 0x60b   :  { %2480 = vpow2.f32 %v681_v46  ;;  %v683_v39 = vmul.f32 1.442695, %v678_v47  ;;  %v679_v53 = vsub.f32 %v663_v28, %v673_v50 }
 0x60d   :  { %2482 = vpow2.f32 %v683_v39  ;;  %v685_v55 = vmul.f32 1.442695, %v679_v53  ;;  %v2906_v39 = vld [vmem:[%s3333_s9] ss:$0 sm:$0xff] }
 0x611   :  { %v2481_v48 = vpop.eup %2480 }
 0x612   :  { %v689_v40 = vsel %vm196_vm6, %v2481_v48, 0.0 }
 0x613   :  { %690 = vadd.xlane.f32.xlu0 %v689_v40  ;;  %v2483_v49 = vpop.eup %2482 }
 0x614   :  { %v692_v51 = vsel %vm196_vm6, %v2483_v49, 0.0 }
 0x61a   :  { %v676_v5 = vpop.xlane.xlu2 %675 }
 0x61b   :  { %v680_v52 = vsub.f32 %v664_v33, %v676_v5  ;;  %693 = vadd.xlane.f32.xlu0 %v692_v51  ;;  %v979_v33 = vld [vmem:[%s3334_s10 + $0x18] sm:$0xff] }
 0x61d   :  { %v687_v54 = vmul.f32 1.442695, %v680_v52 }
 0x61f   :  { %2484 = vpow2.f32 %v687_v54 }
 0x620   :  { %2486 = vpow2.f32 %v685_v55 }
 0x622   :  { %v2427_v56 = vpop.permute.xlu2 %2426 }
 0x623   :  { %v2429_v57 = vunpack.i.h.bf16 %v2427_v56  ;;  %v2428_v59 = vunpack.i.l.bf16 %v2427_v56 }
 0x625   :  { %v2485_v60 = vpop.eup %2484  ;;  %756 = vmatpush.msra.mxu2 %v2428_v59  ;;  %782 = vmatpush.msra.mxu3 %v2429_v57 }
 0x626   :  { %v698_v62 = vsel %vm196_vm6, %v2485_v60, 0.0  ;;  %v2487_v2 = vpop.eup %2486 }
 0x627   :  { %854 = vmatpush.msrb.mxu2 %v2804_v0  ;;  %877 = vmatpush.msrb.mxu3 %v2798_v63  ;;  %v695_v3 = vsel %vm196_vm6, %v2487_v2, 0.0 }
 0x628   :  { %699 = vadd.xlane.f32.xlu1 %v698_v62 }
 0x62f   :  { %709 = vrot.lane.b32.xlu0 %v2767_v44, %s2579_s0 }
 0x630   :  { %696 = vadd.xlane.f32.xlu1 %v695_v3 }
 0x649   :  { %787 = vrot.lane.b32.xlu1 %v2790_v61, %s2579_s0 }
 0x65b   :  { %v924_v4 = vpop.xlane.xlu2 %923 }
 0x65c   :  { %v928_v6 = vmul.f32 %v924_v4, %v2678_v13 }
 0x65e   :  { %v2858_v7 = vsub.f32 %v2842_v37, %v928_v6 }
 0x660   :  { %v932_v63 = vmul.f32 %v2858_v7, %v2858_v7 }
 0x662   :  { %v934_v0 = vsel %vm88_vm1, %v932_v63, 0.0 }
 0x663   :  { %935 = vadd.xlane.f32.xlu0 %v934_v0 }
 0x686   :  { %v691_v8 = vpop.xlane.xlu0 %690 }
 0x68e   :  { %v694_v9 = vpop.xlane.xlu0 %693 }
 0x68f   :  { %2488 = vrcp.f32 %v694_v9 }
 0x690   :  { %2490 = vrcp.f32 %v691_v8 }
 0x695   :  { %v2489_v10 = vpop.eup %2488 }
 0x696   :  { %v706_v44 = vmul.f32 %v2489_v10, %v2483_v49  ;;  %v2491_v11 = vpop.eup %2490 }
 0x697   :  { %v705_v12 = vmul.f32 %v2491_v11, %v2481_v48 }
 0x698   :  { %2319 = vmatmul.msk.f32.vlgmr.msra.gmra.mxu2 %vm196_vm6, %v706_v44 }
 0x69b   :  { %v700_v61 = vpop.xlane.xlu1 %699 }
 0x6a1   :  { %v710_v14 = vpop.permute.xlu0 %709 }
 0x6a2   :  { %730 = vmatpush.msra.mxu0 %v710_v14 }
 0x6a3   :  { %v697_v15 = vpop.xlane.xlu1 %696  ;;  %2318 = vmatmul.msk.f32.vlgmr.msra.gmra.mxu0 %vm196_vm6, %v705_v12 }
 0x6a4   :  { %2492 = vrcp.f32 %v697_v15  ;;  %831 = vmatpush.msrb.mxu0 %v2784_v58  ;;  %v982_v58 = vld [vmem:[%s3334_s10 + $0x30] sm:$0xff] }
 0x6a5   :  { %2494 = vrcp.f32 %v700_v61 }
 0x6a6   :  { %1008 = vmatpush.msra.mxu0 %v982_v58 }
 0x6a8   :  { %1009 = vmatpush.msra.mxu0 %v980_v24  ;;  %v1144_v24 = vld [vmem:[%s3336_s12 + $0x60] sm:$0xff] }
 0x6aa   :  { %v2493_v16 = vpop.eup %2492  ;;  %1010 = vmatpush.msra.mxu0 %v978_v25 }
 0x6ab   :  { %v707_v17 = vmul.f32 %v2493_v16, %v2487_v2  ;;  %v2495_v18 = vpop.eup %2494 }
 0x6ac   :  { %v708_v19 = vmul.f32 %v2495_v18, %v2485_v60  ;;  %1011 = vmatpush.msra.mxu0 %v976_v26 }
 0x6ad   :  { %2320 = vmatmul.msk.f32.vlgmr.msra.gmra.mxu3 %vm196_vm6, %v707_v17 }
 0x6ae   :  { %1031 = vmatpush.msra.mxu3 %v983_v30  ;;  %v1140_v30 = vld [vmem:[%s3336_s12 + $0x40] sm:$0xff] }
 0x6b0   :  { %1032 = vmatpush.msra.mxu3 %v981_v31 }
 0x6b2   :  { %1033 = vmatpush.msra.mxu3 %v979_v33  ;;  %v1139_v33 = vld [vmem:[%s3336_s12 + $0x38] sm:$0xff] }
 0x6b4   :  { %1034 = vmatpush.msra.mxu3 %v977_v36  ;;  %v1137_v36 = vld [vmem:[%s3336_s12 + $0x28] sm:$0xff] }
 0x6bb   :  { %v788_v20 = vpop.permute.xlu1 %787 }
 0x6bc   :  { %808 = vmatpush.msra.mxu1 %v788_v20 }
 0x6bd   :  { %2321 = vmatmul.msk.f32.vlgmr.msra.gmra.mxu1 %vm196_vm6, %v708_v19  ;;  %v1147_v19 = vld [vmem:[%s3336_s12 + $0x78] sm:$0xff] }
 0x6be   :  { %900 = vmatpush.msrb.mxu1 %v2810_v1 }
 0x6d6   :  { %v936_v21 = vpop.xlane.xlu0 %935 }
 0x6d7   :  { %v940_v22 = vmul.f32 %v936_v21, %v2678_v13  ;;  %v1146_v21 = vld [vmem:[%s3336_s12 + $0x70] sm:$0xff] }
 0x6d9   :  { %v942_v23 = vadd.f32 1e-05, %v940_v22 }
 0x6db   :  { %2496 = vrsqrt.f32 %v942_v23  ;;  %vm950_vm11 = vweird.f32 %v942_v23 }
 0x6e1   :  { %v2497_v1 = vpop.eup %2496 }
 0x6e2   :  { %v945_v27 = vmul.f32 %v2497_v1, %v942_v23  ;;  %vm951_vm10 = vweird.f32 %v2497_v1  ;;  %v1145_v23 = vld [vmem:[%s3336_s12 + $0x68] sm:$0xff] }
 0x6e3   :  { %vm952_vm12 = vmor %vm950_vm11, %vm951_vm10 }
 0x6e4   :  { %v946_v28 = vmul.f32 %v2497_v1, %v945_v27  ;;  %v1142_v27 = vld [vmem:[%s3336_s12 + $0x50] sm:$0xff] }
 0x6e6   :  { %v947_v29 = vmul.f32 0.5, %v946_v28 }
 0x6e8   :  { %v948_v34 = vsub.f32 1.5, %v947_v29  ;;  %v1141_v29 = vld [vmem:[%s3336_s12 + $0x48] sm:$0xff] }
 0x6ea   :  { %v949_v35 = vmul.f32 %v2497_v1, %v948_v34  ;;  %v1138_v34 = vld [vmem:[%s3336_s12 + $0x30] sm:$0xff] }
 0x6ec   :  { %v953_v41 = vsel %vm952_vm12, %v2497_v1, %v949_v35  ;;  %v1143_v1 = vld [vmem:[%s3336_s12 + $0x58] sm:$0xff] }
 0x6ed   :  { %v964_v43 = vmul.f32 %v953_v41, %v2858_v7  ;;  %v1136_v41 = vld [vmem:[%s3336_s12 + $0x20] sm:$0xff] }
 0x6ef   :  { %v969_v47 = vmul.f32 %v2898_v42, %v964_v43 }
 0x6f1   :  { %v974_v48 = vadd.f32 %v2906_v39, %v969_v47  ;;  %v1135_v47 = vld [vmem:[%s3336_s12 + $0x18] sm:$0xff] }
 0x71b   :  { %v758_v38 = vpop.f32.mrf.mxu2 }
 0x71c   :  { %2323 = vmatmul.msk.f32.vlgmr.msrb.gmra.mxu2 %vm196_vm6, %v758_v38 }
 0x720   :  { %v732_v46 = vpop.f32.mrf.mxu0 }
 0x721   :  { %2322 = vmatmul.msk.f32.vlgmr.msrb.gmra.mxu0 %vm196_vm6, %v732_v46 }
 0x729   :  { %2326 = vmatmul.msk.f32.vlgmr.msra.gmra.mxu0 %vm88_vm1, %v974_v48 }
 0x730   :  { %v784_v40 = vpop.f32.mrf.mxu3 }
 0x731   :  { %2324 = vmatmul.msk.f32.vlgmr.msrb.gmra.mxu3 %vm196_vm6, %v784_v40 }
 0x732   :  { %1152 = vmatpush.msrb.mxu3 %v1147_v19 }
 0x734   :  { %1153 = vmatpush.msrb.mxu3 %v1146_v21 }
 0x736   :  { %1154 = vmatpush.msrb.mxu3 %v1145_v23 }
 0x738   :  { %1155 = vmatpush.msrb.mxu3 %v1144_v24 }
 0x739   :  { %2328 = vmatmul.msk.f32.vlgmr.msra.gmra.mxu3 %vm88_vm1, %v974_v48  ;;  %v1134_v48 = vld [vmem:[%s3336_s12 + $0x10] sm:$0xff] }
 0x73a   :  { %v810_v49 = vpop.f32.mrf.mxu1  ;;  %1156 = vmatpush.msrb.mxu3 %v1143_v1 }
 0x73b   :  { %2325 = vmatmul.msk.f32.vlgmr.msrb.gmra.mxu1 %vm196_vm6, %v810_v49  ;;  %v1133_v49 = vld [vmem:[%s3336_s12 + $0x8] sm:$0xff] }
 0x73c   :  { %1157 = vmatpush.msrb.mxu3 %v1142_v27 }
 0x73e   :  { %1158 = vmatpush.msrb.mxu3 %v1141_v29 }
 0x740   :  { %1159 = vmatpush.msrb.mxu3 %v1140_v30 }
 0x742   :  { %1160 = vmatpush.msrb.mxu3 %v1139_v33 }
 0x744   :  { %1161 = vmatpush.msrb.mxu3 %v1138_v34 }
 0x746   :  { %1162 = vmatpush.msrb.mxu3 %v1137_v36 }
 0x748   :  { %1163 = vmatpush.msrb.mxu3 %v1136_v41 }
 0x74a   :  { %1164 = vmatpush.msrb.mxu3 %v1135_v47 }
 0x74c   :  { %1165 = vmatpush.msrb.mxu3 %v1134_v48 }
 0x74e   :  { %1166 = vmatpush.msrb.mxu3 %v1133_v49 }
 0x79e   :  { %v833_v50 = vpop.f32.mrf.mxu0 }
 0x79f   :  { %v856_v5 = vpop.f32.mrf.mxu2  ;;  %v905_v51 = vsel %vm88_vm1, %v833_v50, 0.0 }
 0x7a0   :  { %v906_v52 = vsel %vm88_vm1, %v856_v5, 0.0 }
 0x7a1   :  { %v907_v55 = vadd.f32 %v906_v52, %v905_v51  ;;  %v1132_v52 = vld [vmem:[%s3336_s12] sm:$0xff] }
 0x7a2   :  { %1167 = vmatpush.msrb.mxu3 %v1132_v52 }
 0x7b4   :  { %v879_v53 = vpop.f32.mrf.mxu3 }
 0x7b5   :  { %v908_v54 = vsel %vm88_vm1, %v879_v53, 0.0 }
 0x7b6   :  { %v909_v56 = vadd.f32 %v908_v54, %v907_v55 }
 0x7b8   :  { %v902_v57 = vpop.f32.mrf.mxu1 }
 0x7b9   :  { %v910_v59 = vsel %vm88_vm1, %v902_v57, 0.0 }
 0x7ba   :  { %v911_v60 = vadd.f32 %v910_v59, %v909_v56 }
 0x7bc   :  { %v917_v62 = vadd.f32 %v2838_v32, %v911_v60  ;;  %v1036_v8 = vpop.f32.mrf.mxu3 }
 0x7be   :  { %v2919_v2 = vadd.f32 %v917_v62, %v2733_v45  ;;  %v2933_v45 = vld [vmem:[%s3335_s11] sm:$0x3] }
 0x7bf   :  { %v987_v32 = vperm.slane %v2933_v45, 1  ;;  %v986_v21 = vperm.slane %v2933_v45, 0 }
 0x7c0   :  { %v925_v3 = vsel %vm88_vm1, %v2919_v2, 0.0 }
 0x7c1   :  { %926 = vadd.xlane.f32.xlu1 %v925_v3  ;;  %v2938_v9 = vadd.f32 %v1036_v8, %v987_v32 }
 0x7c3   :  { %v2941_v10 = vmul.f32 0.70710677, %v2938_v9 }
 0x7c5   :  { %v1046_v44 = vmul.f32 %v2941_v10, %v2941_v10 }
 0x7c7   :  { %v1047_v61 = vmin.f32 %v1046_v44, 16.0 }
 0x7c9   :  { %v1059_v11 = vmul.f32 3.8918573e-05, %v1047_v61  ;;  %v1048_v22 = vmul.f32 2.1237322e-06, %v1047_v61 }
 0x7cb   :  { %v1060_v12 = vadd.f32 0.001143296, %v1059_v11  ;;  %v1049_v25 = vadd.f32 0.00028619796, %v1048_v22  ;;  %v1042_v22 = vmul.f32 0.5, %v2938_v9 }
 0x7cd   :  { %v1061_v14 = vmul.f32 %v1060_v12, %v1047_v61  ;;  %v1050_v28 = vmul.f32 %v1049_v25, %v1047_v61 }
 0x7cf   :  { %v1062_v15 = vadd.f32 0.014752088, %v1061_v14  ;;  %v1051_v31 = vadd.f32 0.0036580483, %v1050_v28 }
 0x7d1   :  { %v1063_v16 = vmul.f32 %v1062_v15, %v1047_v61  ;;  %v1052_v35 = vmul.f32 %v1051_v31, %v1047_v61 }
 0x7d3   :  { %v1064_v17 = vadd.f32 0.112945676, %v1063_v16  ;;  %v1053_v43 = vadd.f32 0.05243302, %v1052_v35 }
 0x7d5   :  { %v1065_v18 = vmul.f32 %v1064_v17, %v1047_v61  ;;  %v1054_v50 = vmul.f32 %v1053_v43, %v1047_v61 }
 0x7d7   :  { %v1066_v20 = vadd.f32 0.4994258, %v1065_v18  ;;  %v1055_v54 = vadd.f32 0.18741608, %v1054_v50 }
 0x7d9   :  { %v1067_v58 = vmul.f32 %v1066_v20, %v1047_v61  ;;  %v1056_v56 = vmul.f32 %v1055_v54, %v1047_v61 }
 0x7db   :  { %v1068_v26 = vadd.f32 1.0, %v1067_v58 }
 0x7dd   :  { %2498 = vrcp.f32 %v1068_v26  ;;  %v1080_v59 = vand.u32 2147483648, %v1068_v26  ;;  %vm1074_vm14 = vweird.f32 %v1068_v26  ;;  %v1078_v62 = vand.u32 2147483647, %v1068_v26 }
 0x7df   :  { %vm1079_vm0 = vcmp.eq.f32.partialorder %v1078_v62, 8.507059e+37 }
 0x7e3   :  { %v2499_v38 = vpop.eup %2498 }
 0x7e4   :  { %v1070_v46 = vmul.f32 %v2499_v38, %v1068_v26  ;;  %vm1075_vm13 = vweird.f32 %v2499_v38 }
 0x7e5   :  { %vm1076_vm15 = vmor %vm1074_vm14, %vm1075_vm13 }
 0x7e6   :  { %v1071_v5 = vsub.f32 1.0, %v1070_v46 }
 0x7e8   :  { %v1072_v55 = vmul.f32 %v2499_v38, %v1071_v5 }
 0x7ea   :  { %v1073_v57 = vadd.f32 %v2499_v38, %v1072_v55 }
 0x834   :  { %v927_v4 = vpop.xlane.xlu1 %926 }
 0x835   :  { %v929_v6 = vmul.f32 %v927_v4, %v2678_v13  ;;  %v1057_v4 = vadd.f32 1.1283791, %v1056_v56 }
 0x837   :  { %v2925_v7 = vsub.f32 %v2919_v2, %v929_v6  ;;  %v1077_v6 = vsel %vm1076_vm15, %v2499_v38, %v1073_v57  ;;  %v1058_v11 = vmul.f32 %v1057_v4, %v2941_v10  ;;  %v1013_v10 = vpop.f32.mrf.mxu0 }
 0x838   :  { %v1014_v58 = vadd.f32 %v1013_v10, %v986_v21  ;;  %v2337_v10 = vld [vmem:[%s3329_s5 + $0x38] sm:$0xff] }
 0x839   :  { %v933_v63 = vmul.f32 %v2925_v7, %v2925_v7  ;;  %1258 = vmatpush.msra.mxu1 %v2337_v10 }
 0x83b   :  { %v937_v0 = vsel %vm88_vm1, %v933_v63, 0.0  ;;  %v1081_v63 = vor.u32 1.1754944e-38, %v1080_v59 }
 0x83c   :  { %938 = vadd.xlane.f32.xlu2 %v937_v0 }
 0x83d   :  { %v1082_v8 = vsel %vm1079_vm0, %v1081_v63, %v1077_v6 }
 0x83e   :  { %v1083_v61 = vmul.f32 %v1082_v8, %v1058_v11 }
 0x840   :  { %v2330_v16 = vclamps-f32 %v1083_v61, 1.0 }
 0x842   :  { %v1126_v19 = vadd.f32 1.0, %v2330_v16 }
 0x844   :  { %v1128_v23 = vmul.f32 %v1126_v19, %v1042_v22 }
 0x846   :  { %v1130_v24 = vmul.f32 %v1128_v23, %v1014_v58  ;;  %v2336_v23 = vld [vmem:[%s3329_s5 + $0x30] sm:$0xff]  ;;  %v2335_v58 = vld [vmem:[%s3329_s5 + $0x28] sm:$0xff] }
 0x847   :  { %1259 = vmatpush.msra.mxu1 %v2336_v23 }
 0x849   :  { %1260 = vmatpush.msra.mxu1 %v2335_v58 }
 0x8af   :  { %v939_v40 = vpop.xlane.xlu2 %938 }
 0x8b0   :  { %v941_v51 = vmul.f32 %v939_v40, %v2678_v13 }
 0x8b2   :  { %v943_v53 = vadd.f32 1e-05, %v941_v51 }
 0x8b4   :  { %2500 = vrsqrt.f32 %v943_v53  ;;  %vm960_vm3 = vweird.f32 %v943_v53 }
 0x8ba   :  { %v2501_v60 = vpop.eup %2500 }
 0x8bb   :  { %v955_v3 = vmul.f32 %v2501_v60, %v943_v53  ;;  %vm961_vm2 = vweird.f32 %v2501_v60 }
 0x8bc   :  { %vm962_vm4 = vmor %vm960_vm3, %vm961_vm2 }
 0x8bd   :  { %v956_v0 = vmul.f32 %v2501_v60, %v955_v3 }
 0x8bf   :  { %v957_v44 = vmul.f32 0.5, %v956_v0 }
 0x8c1   :  { %v958_v12 = vsub.f32 1.5, %v957_v44 }
 0x8c3   :  { %v959_v14 = vmul.f32 %v2501_v60, %v958_v12 }
 0x8c5   :  { %v963_v15 = vsel %vm962_vm4, %v2501_v60, %v959_v14 }
 0x8c6   :  { %v965_v17 = vmul.f32 %v963_v15, %v2925_v7 }
 0x8c8   :  { %v970_v18 = vmul.f32 %v2898_v42, %v965_v17 }
 0x8ca   :  { %v975_v20 = vadd.f32 %v2906_v39, %v970_v18  ;;  %v2451_v39 = vld [vmem:[%s3337_s13] ss:$0 sm:$0xff] }
 0x8cc   :  { %2327 = vmatmul.msk.f32.gmra.mxu0 %vm88_vm1, %v975_v20  ;;  %2329 = vmatmul.msk.f32.gmra.mxu3 %vm88_vm1, %v975_v20 }
 0x8d4   :  { %1168 = vmatmul.f32.vlgmr.msrb.gmra.mxu3 %v1130_v24 }
 0x949   :  { %v1016_v0 = vpop.f32.mrf.mxu0 }
 0x94a   :  { %v1017_v11 = vadd.f32 %v1016_v0, %v986_v21 }
 0x94f   :  { %v1039_v25 = vpop.f32.mrf.mxu3 }
 0x950   :  { %v1040_v42 = vadd.f32 %v1039_v25, %v987_v32 }
 0x952   :  { %v1045_v7 = vmul.f32 0.70710677, %v1040_v42  ;;  %v1043_v8 = vmul.f32 0.5, %v1040_v42 }
 0x954   :  { %v1086_v1 = vmul.f32 %v1045_v7, %v1045_v7 }
 0x956   :  { %v1087_v9 = vmin.f32 %v1086_v1, 16.0 }
 0x957   :  { %v1169_v26 = vpop.f32.mrf.mxu3 }
 0x958   :  { %v1088_v27 = vmul.f32 2.1237322e-06, %v1087_v9  ;;  %v1170_v28 = vadd.f32 %v2451_v39, %v1169_v26  ;;  %v1099_v29 = vmul.f32 3.8918573e-05, %v1087_v9 }
 0x95a   :  { %v1089_v30 = vadd.f32 0.00028619796, %v1088_v27  ;;  %v3008_v31 = vadd.f32 %v1170_v28, %v2842_v37  ;;  %v1100_v33 = vadd.f32 0.001143296, %v1099_v29  ;;  %v2452_v28 = vld [vmem:[%s3327_s3 + $0x1] ss:$0 sm:$0xff] }
 0x95c   :  { %v1090_v34 = vmul.f32 %v1089_v30, %v1087_v9  ;;  %v1181_v45 = vsel %vm88_vm1, %v3008_v31, 0.0  ;;  %v1101_v32 = vmul.f32 %v1100_v33, %v1087_v9  ;;  %v2453_v33 = vld [vmem:[%s3328_s4 + $0x1] ss:$0 sm:$0xff] }
 0x95d   :  { %1182 = vadd.xlane.f32.xlu0 %v1181_v45 }
 0x95e   :  { %v1102_v36 = vadd.f32 0.014752088, %v1101_v32  ;;  %v1091_v35 = vadd.f32 0.0036580483, %v1090_v34 }
 0x960   :  { %v1103_v38 = vmul.f32 %v1102_v36, %v1087_v9  ;;  %v1092_v43 = vmul.f32 %v1091_v35, %v1087_v9 }
 0x962   :  { %v1104_v41 = vadd.f32 0.112945676, %v1103_v38  ;;  %v1093_v48 = vadd.f32 0.05243302, %v1092_v43 }
 0x964   :  { %v1105_v46 = vmul.f32 %v1104_v41, %v1087_v9  ;;  %v1094_v50 = vmul.f32 %v1093_v48, %v1087_v9 }
 0x966   :  { %v1106_v47 = vadd.f32 0.4994258, %v1105_v46  ;;  %v1095_v37 = vadd.f32 0.18741608, %v1094_v50 }
 0x968   :  { %v1107_v40 = vmul.f32 %v1106_v47, %v1087_v9  ;;  %v1096_v51 = vmul.f32 %v1095_v37, %v1087_v9 }
 0x96a   :  { %v1108_v49 = vadd.f32 1.0, %v1107_v40  ;;  %v1097_v55 = vadd.f32 1.1283791, %v1096_v51 }
 0x96c   :  { %2502 = vrcp.f32 %v1108_v49  ;;  %v1120_v54 = vand.u32 2147483648, %v1108_v49  ;;  %v1118_v57 = vand.u32 2147483647, %v1108_v49  ;;  %vm1114_vm7 = vweird.f32 %v1108_v49 }
 0x96d   :  { %v1098_v62 = vmul.f32 %v1097_v55, %v1045_v7 }
 0x96e   :  { %v1121_v60 = vor.u32 1.1754944e-38, %v1120_v54  ;;  %vm1119_vm9 = vcmp.eq.f32.partialorder %v1118_v57, 8.507059e+37 }
 0x972   :  { %v2503_v5 = vpop.eup %2502 }
 0x973   :  { %v1110_v52 = vmul.f32 %v2503_v5, %v1108_v49  ;;  %vm1115_vm5 = vweird.f32 %v2503_v5 }
 0x974   :  { %vm1116_vm8 = vmor %vm1114_vm7, %vm1115_vm5 }
 0x975   :  { %v1111_v53 = vsub.f32 1.0, %v1110_v52 }
 0x977   :  { %v1112_v56 = vmul.f32 %v2503_v5, %v1111_v53 }
 0x979   :  { %v1113_v59 = vadd.f32 %v2503_v5, %v1112_v56 }
 0x97b   :  { %v1117_v3 = vsel %vm1116_vm8, %v2503_v5, %v1113_v59 }
 0x97c   :  { %v1122_v4 = vsel %vm1119_vm9, %v1121_v60, %v1117_v3 }
 0x97d   :  { %v1123_v6 = vmul.f32 %v1122_v4, %v1098_v62 }
 0x97f   :  { %v2331_v63 = vclamps-f32 %v1123_v6, 1.0 }
 0x981   :  { %v1127_v44 = vadd.f32 1.0, %v2331_v63 }
 0x983   :  { %v1129_v12 = vmul.f32 %v1127_v44, %v1043_v8 }
 0x985   :  { %v1131_v61 = vmul.f32 %v1129_v12, %v1017_v11 }
 0x987   :  { %1171 = vmatmul.f32.gmra.mxu3 %v1131_v61 }
 0x9d0   :  { %v1183_v14 = vpop.xlane.xlu0 %1182 }
 0x9d1   :  { %v1187_v15 = vmul.f32 %v1183_v14, %v2678_v13 }
 0x9d3   :  { %v1189_v16 = vsub.f32 %v3008_v31, %v1187_v15 }
 0x9d5   :  { %v1191_v17 = vmul.f32 %v1189_v16, %v1189_v16 }
 0x9d7   :  { %v1193_v18 = vsel %vm88_vm1, %v1191_v17, 0.0 }
 0x9d8   :  { %1194 = vadd.xlane.f32.xlu2 %v1193_v18 }
 0xa0a   :  { %v1172_v19 = vpop.f32.mrf.mxu3 }
 0xa0b   :  { %v1173_v20 = vadd.f32 %v2451_v39, %v1172_v19 }
 0xa0d   :  { %v3016_v22 = vadd.f32 %v1173_v20, %v2919_v2  ;;  %v2334_v2 = vld [vmem:[%s3329_s5 + $0x20] sm:$0xff] }
 0xa0e   :  { %1261 = vmatpush.msra.mxu1 %v2334_v2 }
 0xa0f   :  { %v1184_v21 = vsel %vm88_vm1, %v3016_v22, 0.0 }
 0xa10   :  { %1185 = vadd.xlane.f32.xlu1 %v1184_v21 }
 0xa4b   :  { %v1195_v24 = vpop.xlane.xlu2 %1194 }
 0xa4c   :  { %v1199_v25 = vmul.f32 %v1195_v24, %v2678_v13 }
 0xa4e   :  { %v1201_v42 = vadd.f32 1e-05, %v1199_v25 }
 0xa50   :  { %2504 = vrsqrt.f32 %v1201_v42  ;;  %vm1209_vm11 = vweird.f32 %v1201_v42 }
 0xa56   :  { %v2505_v7 = vpop.eup %2504 }
 0xa57   :  { %v1204_v1 = vmul.f32 %v2505_v7, %v1201_v42  ;;  %vm1210_vm10 = vweird.f32 %v2505_v7 }
 0xa58   :  { %vm1211_vm12 = vmor %vm1209_vm11, %vm1210_vm10 }
 0xa59   :  { %v1205_v39 = vmul.f32 %v2505_v7, %v1204_v1 }
 0xa5b   :  { %v1206_v9 = vmul.f32 0.5, %v1205_v39 }
 0xa5d   :  { %v1207_v26 = vsub.f32 1.5, %v1206_v9 }
 0xa5f   :  { %v1208_v27 = vmul.f32 %v2505_v7, %v1207_v26 }
 0xa61   :  { %v1212_v29 = vsel %vm1211_vm12, %v2505_v7, %v1208_v27 }
 0xa62   :  { %v1223_v30 = vmul.f32 %v1212_v29, %v1189_v16 }
 0xa64   :  { %v1228_v34 = vmul.f32 %v2452_v28, %v1223_v30 }
 0xa66   :  { %v1233_v45 = vadd.f32 %v2453_v33, %v1228_v34 }
 0xa68   :  { %2338 = vmatmul.msk.f32.vlgmr.msra.gmra.mxu1 %vm88_vm1, %v1233_v45 }
 0xa83   :  { %v1186_v32 = vpop.xlane.xlu1 %1185 }
 0xa84   :  { %v1188_v36 = vmul.f32 %v1186_v32, %v2678_v13 }
 0xa86   :  { %v1190_v35 = vsub.f32 %v3016_v22, %v1188_v36 }
 0xa88   :  { %v1192_v38 = vmul.f32 %v1190_v35, %v1190_v35 }
 0xa8a   :  { %v1196_v41 = vsel %vm88_vm1, %v1192_v38, 0.0 }
 0xa8b   :  { %1197 = vadd.xlane.f32.xlu1 %v1196_v41 }
 0xae5   :  { %v1263_v43 = vpop.f32.mrf.mxu1 }
 0xae6   :  { %1277 = vrot.lane.b32.xlu2 %v1263_v43, %s2578_s20  ;;  %1279 = vrot.lane.b32.xlu0 %v1263_v43, %s2575_s17 }
 0xae7   :  { %1275 = vrot.lane.b32.xlu1 %v1263_v43, %s2576_s18 }
 0xaee   :  { %1281 = vrot.lane.b32.xlu0 %v1263_v43, %s2577_s19 }
 0xafe   :  { %v1198_v46 = vpop.xlane.xlu1 %1197 }
 0xaff   :  { %v1200_v47 = vmul.f32 %v1198_v46, %v2678_v13 }
 0xb01   :  { %v1202_v48 = vadd.f32 1e-05, %v1200_v47  ;;  %v3100_v47 = vld [vmem:[%s3330_s6 + $0x38] sm:$0xff] }
 0xb02   :  { %1624 = vmatpush.msra.mxu3 %v3100_v47 }
 0xb03   :  { %2506 = vrsqrt.f32 %v1202_v48  ;;  %vm1219_vm14 = vweird.f32 %v1202_v48 }
 0xb09   :  { %v2507_v40 = vpop.eup %2506 }
 0xb0a   :  { %v1214_v49 = vmul.f32 %v2507_v40, %v1202_v48  ;;  %vm1220_vm13 = vweird.f32 %v2507_v40  ;;  %v3106_v48 = vld [vmem:[%s3330_s6 + $0x30] sm:$0xff] }
 0xb0b   :  { %vm1221_vm15 = vmor %vm1219_vm14, %vm1220_vm13 }
 0xb0c   :  { %v1215_v50 = vmul.f32 %v2507_v40, %v1214_v49 }
 0xb0e   :  { %v1216_v37 = vmul.f32 0.5, %v1215_v50 }
 0xb10   :  { %v1217_v5 = vsub.f32 1.5, %v1216_v37 }
 0xb12   :  { %v1218_v51 = vmul.f32 %v2507_v40, %v1217_v5 }
 0xb14   :  { %v1222_v52 = vsel %vm1221_vm15, %v2507_v40, %v1218_v51 }
 0xb15   :  { %v1224_v53 = vmul.f32 %v1222_v52, %v1190_v35 }
 0xb17   :  { %v1229_v54 = vmul.f32 %v2452_v28, %v1224_v53 }
 0xb19   :  { %v1234_v55 = vadd.f32 %v2453_v33, %v1229_v54 }
 0xb1b   :  { %2339 = vmatmul.msk.f32.gmra.mxu1 %vm88_vm1, %v1234_v55 }
 0xb40   :  { %v3049_v56 = vpop.permute.xlu2 %1277 }
 0xb41   :  { %1333 = vrot.lane.b32.xlu0 %v3049_v56, %s2577_s19 }
 0xb58   :  { %v1280_v57 = vpop.permute.xlu0 %1279 }
 0xb59   :  { %1359 = vrot.lane.b32.xlu2 %v1280_v57, %s2577_s19  ;;  %v3054_v59 = vpop.permute.xlu1 %1275  ;;  %v2430_v19 = vpack.i.bf16 %v1280_v57, %v1263_v43 }
 0xb60   :  { %v1282_v60 = vpop.permute.xlu0 %1281 }
 0xb61   :  { %2344 = vmatpush.xpose.msk.msrb.mxu0 %vm196_vm6, %v1282_v60  ;;  %1307 = vrot.lane.b32.xlu2 %v3054_v59, %s2577_s19 }
 0xb64   :  { %2345 = vmatmul.msk.f32.vlgmr.msrb.gmra.mxu0 %vm196_vm6, %v1263_v43 }
 0xb98   :  { %v3069_v8 = vpop.f32.mrf.mxu1 }
 0xbb3   :  { %v1360_v62 = vpop.permute.xlu2 %1359  ;;  %v1334_v3 = vpop.permute.xlu0 %1333 }
 0xbb4   :  { %2348 = vmatpush.xpose.msk.msrb.mxu1 %vm196_vm6, %v1334_v3  ;;  %2350 = vmatpush.xpose.msk.msra.mxu0 %vm196_vm6, %v1360_v62  ;;  %v3126_v3 = vld [vmem:[%s3330_s6 + $0x20] sm:$0xff] }
 0xbb7   :  { %2349 = vmatmul.msk.f32.vlgmr.msrb.gmra.mxu1 %vm196_vm6, %v3049_v56  ;;  %2351 = vmatmul.msk.f32.vlgmr.msra.gmra.mxu0 %vm196_vm6, %v1280_v57 }
 0xbbb   :  { %v1308_v4 = vpop.permute.xlu2 %1307 }
 0xbbc   :  { %2346 = vmatpush.xpose.msk.msra.mxu2 %vm196_vm6, %v1308_v4 }
 0xbbf   :  { %2347 = vmatmul.msk.f32.vlgmr.msra.gmra.mxu2 %vm196_vm6, %v3054_v59 }
 0xbe1   :  { %v1304_v6 = vpop.f32.mrf.mxu0 }
 0xbe2   :  { %v1385_v63 = vmul.f32 0.35355338, %v1304_v6 }
 0xbe4   :  { %v1389_v0 = vsel %vm196_vm6, %v1385_v63, -inf }
 0xbe5   :  { %1390 = vmax.xlane.f32.xlu0 %v1389_v0 }
 0xc34   :  { %v1356_v44 = vpop.f32.mrf.mxu1  ;;  %v1382_v11 = vpop.f32.mrf.mxu0 }
 0xc35   :  { %v1387_v12 = vmul.f32 0.35355338, %v1356_v44  ;;  %v1388_v61 = vmul.f32 0.35355338, %v1382_v11 }
 0xc37   :  { %v1398_v14 = vsel %vm196_vm6, %v1388_v61, -inf  ;;  %v1395_v15 = vsel %vm196_vm6, %v1387_v12, -inf }
 0xc38   :  { %1399 = vmax.xlane.f32.xlu1 %v1398_v14  ;;  %1396 = vmax.xlane.f32.xlu2 %v1395_v15 }
 0xc42   :  { %v1330_v16 = vpop.f32.mrf.mxu2 }
 0xc43   :  { %v1386_v17 = vmul.f32 0.35355338, %v1330_v16 }
 0xc45   :  { %v1392_v18 = vsel %vm196_vm6, %v1386_v17, -inf }
 0xc46   :  { %1393 = vmax.xlane.f32.xlu0 %v1392_v18 }
 0xc58   :  { %v1391_v20 = vpop.xlane.xlu0 %1390 }
 0xc59   :  { %v1401_v21 = vsub.f32 %v1385_v63, %v1391_v20 }
 0xc5a   :  { %2431 = vrot.lane.b32.xlu0 %v2430_v19, %s2579_s0 }
 0xc5b   :  { %v1405_v10 = vmul.f32 1.442695, %v1401_v21 }
 0xc5d   :  { %2508 = vpow2.f32 %v1405_v10 }
 0xc62   :  { %1639 = vrot.lane.b32.xlu0 %v3069_v8, %s2578_s20 }
 0xc63   :  { %v2509_v23 = vpop.eup %2508 }
 0xc64   :  { %v1413_v58 = vsel %vm196_vm6, %v2509_v23, 0.0 }
 0xc65   :  { %1414 = vadd.xlane.f32.xlu1 %v1413_v58 }
 0xc6a   :  { %1641 = vrot.lane.b32.xlu0 %v3069_v8, %s2575_s17 }
 0xcab   :  { %v1400_v2 = vpop.xlane.xlu1 %1399  ;;  %v1397_v24 = vpop.xlane.xlu2 %1396 }
 0xcac   :  { %v1404_v25 = vsub.f32 %v1388_v61, %v1400_v2  ;;  %v1403_v42 = vsub.f32 %v1387_v12, %v1397_v24 }
 0xcae   :  { %v1411_v7 = vmul.f32 1.442695, %v1404_v25  ;;  %v1409_v1 = vmul.f32 1.442695, %v1403_v42 }
 0xcb0   :  { %2510 = vpow2.f32 %v1411_v7 }
 0xcb1   :  { %2512 = vpow2.f32 %v1409_v1 }
 0xcb6   :  { %v2511_v39 = vpop.eup %2510 }
 0xcb7   :  { %v2513_v9 = vpop.eup %2512  ;;  %v1422_v26 = vsel %vm196_vm6, %v2511_v39, 0.0 }
 0xcb8   :  { %1423 = vadd.xlane.f32.xlu2 %v1422_v26  ;;  %v1419_v27 = vsel %vm196_vm6, %v2513_v9, 0.0 }
 0xcb9   :  { %1420 = vadd.xlane.f32.xlu1 %v1419_v27  ;;  %v1394_v28 = vpop.xlane.xlu0 %1393 }
 0xcba   :  { %v1402_v29 = vsub.f32 %v1386_v17, %v1394_v28 }
 0xcbc   :  { %v1407_v30 = vmul.f32 1.442695, %v1402_v29 }
 0xcbe   :  { %2514 = vpow2.f32 %v1407_v30 }
 0xcc4   :  { %v2515_v33 = vpop.eup %2514 }
 0xcc5   :  { %v1416_v34 = vsel %vm196_vm6, %v2515_v33, 0.0 }
 0xcc6   :  { %1417 = vadd.xlane.f32.xlu1 %v1416_v34 }
 0xccc   :  { %v2432_v45 = vpop.permute.xlu0 %2431 }
 0xccd   :  { %v2434_v32 = vunpack.i.h.bf16 %v2432_v45  ;;  %v2433_v36 = vunpack.i.l.bf16 %v2432_v45 }
 0xccf   :  { %1454 = vmatpush.msrb.mxu2 %v2433_v36 }
 0xcd0   :  { %1485 = vrot.lane.b32.xlu2 %v3049_v56, %s2579_s0 }
 0xcd1   :  { %1532 = vmatpush.msra.mxu2 %v2434_v32 }
 0xcd4   :  { %v3085_v35 = vpop.permute.xlu0 %1639 }
 0xcd5   :  { %1695 = vrot.lane.b32.xlu0 %v3085_v35, %s2577_s19 }
 0xcd8   :  { %v1415_v38 = vpop.xlane.xlu1 %1414  ;;  %1637 = vrot.lane.b32.xlu2 %v3069_v8, %s2576_s18 }
 0xcd9   :  { %2516 = vrcp.f32 %v1415_v38 }
 0xcdc   :  { %v1642_v43 = vpop.permute.xlu0 %1641 }
 0xcdd   :  { %1643 = vrot.lane.b32.xlu0 %v3069_v8, %s2577_s19  ;;  %v2435_v16 = vpack.i.bf16 %v1642_v43, %v3085_v35 }
 0xcdf   :  { %v2517_v41 = vpop.eup %2516  ;;  %1459 = vrot.lane.b32.xlu1 %v3054_v59, %s2579_s0  ;;  %v3120_v59 = vld [vmem:[%s3330_s6 + $0x28] sm:$0xff] }
 0xce0   :  { %v1429_v46 = vmul.f32 %v2517_v41, %v2509_v23  ;;  %1721 = vrot.lane.b32.xlu2 %v1642_v43, %s2577_s19 }
 0xce2   :  { %2352 = vmatmul.msk.f32.vlgmr.msrb.gmra.mxu2 %vm196_vm6, %v1429_v46 }
 0xce3   :  { %1601 = vmatpush.msrb.mxu2 %v3106_v48 }
 0xd2b   :  { %v1424_v40 = vpop.xlane.xlu2 %1423 }
 0xd2c   :  { %v1421_v49 = vpop.xlane.xlu1 %1420  ;;  %2518 = vrcp.f32 %v1424_v40 }
 0xd2d   :  { %2520 = vrcp.f32 %v1421_v49 }
 0xd32   :  { %v2519_v50 = vpop.eup %2518 }
 0xd33   :  { %v2521_v37 = vpop.eup %2520  ;;  %v1432_v5 = vmul.f32 %v2519_v50, %v2511_v39  ;;  %v1486_v51 = vpop.permute.xlu2 %1485 }
 0xd34   :  { %v1431_v52 = vmul.f32 %v2521_v37, %v2513_v9  ;;  %1506 = vmatpush.msrb.mxu0 %v1486_v51 }
 0xd35   :  { %2355 = vmatmul.msk.f32.vlgmr.msra.gmra.mxu2 %vm196_vm6, %v1432_v5 }
 0xd36   :  { %2354 = vmatmul.msk.f32.vlgmr.msrb.gmra.mxu0 %vm196_vm6, %v1431_v52 }
 0xd37   :  { %1578 = vmatpush.msra.mxu0 %v3120_v59 }
 0xd39   :  { %v1418_v55 = vpop.xlane.xlu1 %1417 }
 0xd3a   :  { %2522 = vrcp.f32 %v1418_v55 }
 0xd3b   :  { %v3111_v53 = vpop.permute.xlu2 %1637 }
 0xd3c   :  { %1669 = vrot.lane.b32.xlu1 %v3111_v53, %s2577_s19 }
 0xd40   :  { %v2523_v57 = vpop.eup %2522 }
 0xd41   :  { %v1430_v60 = vmul.f32 %v2523_v57, %v2515_v33 }
 0xd43   :  { %v1722_v54 = vpop.permute.xlu2 %1721 }
 0xd44   :  { %2366 = vmatpush.xpose.msk.msrb.mxu3 %vm196_vm6, %v1722_v54 }
 0xd47   :  { %v1696_v56 = vpop.permute.xlu0 %1695 }
 0xd48   :  { %2364 = vmatpush.xpose.msk.msra.mxu2 %vm196_vm6, %v1696_v56  ;;  %v2440_v56 = vpack.i.bf16 %v3111_v53, %v3069_v8 }
 0xd4f   :  { %v1644_v4 = vpop.permute.xlu0 %1643 }
 0xd51   :  { %v1460_v62 = vpop.permute.xlu1 %1459 }
 0xd52   :  { %1480 = vmatpush.msra.mxu1 %v1460_v62 }
 0xd53   :  { %2353 = vmatmul.msk.f32.vlgmr.msra.gmra.mxu1 %vm196_vm6, %v1430_v60 }
 0xd54   :  { %1555 = vmatpush.msrb.mxu1 %v3126_v3 }
 0xd56   :  { %2360 = vmatpush.xpose.msk.msra.mxu1 %vm196_vm6, %v1644_v4 }
 0xd65   :  { %v1456_v6 = vpop.f32.mrf.mxu2 }
 0xd66   :  { %2356 = vmatmul.msk.f32.vlgmr.msrb.gmra.mxu1 %vm196_vm6, %v1456_v6 }
 0xd6e   :  { %2361 = vmatmul.msk.f32.vlgmr.msra.gmra.mxu1 %vm196_vm6, %v3069_v8 }
 0xdae   :  { %v1670_v63 = vpop.permute.xlu1 %1669 }
 0xdaf   :  { %2362 = vmatpush.xpose.msk.msrb.mxu0 %vm196_vm6, %v1670_v63 }
 0xdb3   :  { %v1508_v0 = vpop.f32.mrf.mxu0 }
 0xdb4   :  { %2358 = vmatmul.msk.f32.vlgmr.msrb.gmra.mxu2 %vm196_vm6, %v1508_v0 }
 0xdb8   :  { %v1534_v44 = vpop.f32.mrf.mxu2 }
 0xdb9   :  { %2359 = vmatmul.msk.f32.vlgmr.msra.gmra.mxu3 %vm196_vm6, %v1534_v44 }
 0xdbc   :  { %2365 = vmatmul.msk.f32.vlgmr.msra.gmra.mxu2 %vm196_vm6, %v3085_v35 }
 0xdc1   :  { %2367 = vmatmul.msk.f32.vlgmr.msrb.gmra.mxu3 %vm196_vm6, %v1642_v43 }
 0xdd0   :  { %v1482_v11 = vpop.f32.mrf.mxu1 }
 0xdd1   :  { %2357 = vmatmul.msk.f32.vlgmr.msra.gmra.mxu0 %vm196_vm6, %v1482_v11 }
 0xdd9   :  { %2363 = vmatmul.msk.f32.vlgmr.msrb.gmra.mxu0 %vm196_vm6, %v3111_v53 }
 0xde3   :  { %v1557_v12 = vpop.f32.mrf.mxu1 }
 0xde4   :  { %v1629_v24 = vsel %vm88_vm1, %v1557_v12, 0.0 }
 0xdeb   :  { %v1666_v61 = vpop.f32.mrf.mxu1 }
 0xdec   :  { %v1747_v14 = vmul.f32 0.35355338, %v1666_v61 }
 0xdee   :  { %v1751_v15 = vsel %vm196_vm6, %v1747_v14, -inf }
 0xdef   :  { %1752 = vmax.xlane.f32.xlu1 %v1751_v15 }
 0xe08   :  { %2436 = vrot.lane.b32.xlu1 %v2435_v16, %s2579_s0 }
 0xe37   :  { %v1603_v17 = vpop.f32.mrf.mxu2 }
 0xe38   :  { %v1632_v7 = vsel %vm88_vm1, %v1603_v17, 0.0 }
 0xe3c   :  { %v1626_v18 = vpop.f32.mrf.mxu3 }
 0xe3d   :  { %v1634_v39 = vsel %vm88_vm1, %v1626_v18, 0.0 }
 0xe3f   :  { %v1718_v19 = vpop.f32.mrf.mxu2 }
 0xe40   :  { %v1749_v20 = vmul.f32 0.35355338, %v1718_v19 }
 0xe42   :  { %v1757_v21 = vsel %vm196_vm6, %v1749_v20, -inf }
 0xe43   :  { %1758 = vmax.xlane.f32.xlu2 %v1757_v21 }
 0xe44   :  { %v1744_v10 = vpop.f32.mrf.mxu3 }
 0xe45   :  { %v1750_v23 = vmul.f32 0.35355338, %v1744_v10 }
 0xe47   :  { %v1760_v58 = vsel %vm196_vm6, %v1750_v23, -inf }
 0xe48   :  { %1761 = vmax.xlane.f32.xlu0 %v1760_v58  ;;  %v2385_v58 = vld [vmem:[%s3334_s10 + $0x70] sm:$0xff] }
 0xe4e   :  { %v1580_v2 = vpop.f32.mrf.mxu0 }
 0xe4f   :  { %v1630_v25 = vsel %vm88_vm1, %v1580_v2, 0.0  ;;  %v2386_v2 = vld [vmem:[%s3334_s10 + $0x78] sm:$0xff] }
 0xe50   :  { %v1631_v42 = vadd.f32 %v1630_v25, %v1629_v24  ;;  %v2383_v25 = vld [vmem:[%s3334_s10 + $0x60] sm:$0xff] }
 0xe52   :  { %v1633_v1 = vadd.f32 %v1632_v7, %v1631_v42  ;;  %v2384_v42 = vld [vmem:[%s3334_s10 + $0x68] sm:$0xff]  ;;  %v2381_v7 = vld [vmem:[%s3334_s10 + $0x50] sm:$0xff] }
 0xe54   :  { %v1635_v9 = vadd.f32 %v1634_v39, %v1633_v1  ;;  %v2382_v1 = vld [vmem:[%s3334_s10 + $0x58] sm:$0xff]  ;;  %v2379_v39 = vld [vmem:[%s3334_s10 + $0x40] sm:$0xff] }
 0xe56   :  { %v1692_v26 = vpop.f32.mrf.mxu0 }
 0xe57   :  { %v1748_v27 = vmul.f32 0.35355338, %v1692_v26 }
 0xe59   :  { %v1754_v28 = vsel %vm196_vm6, %v1748_v27, -inf }
 0xe5a   :  { %1755 = vmax.xlane.f32.xlu2 %v1754_v28 }
 0xe62   :  { %v1753_v29 = vpop.xlane.xlu1 %1752 }
 0xe63   :  { %v1763_v30 = vsub.f32 %v1747_v14, %v1753_v29 }
 0xe65   :  { %v1767_v33 = vmul.f32 1.442695, %v1763_v30 }
 0xe67   :  { %2524 = vpow2.f32 %v1767_v33 }
 0xe6d   :  { %v2525_v34 = vpop.eup %2524 }
 0xe6e   :  { %v1775_v45 = vsel %vm196_vm6, %v2525_v34, 0.0 }
 0xe6f   :  { %1776 = vadd.xlane.f32.xlu2 %v1775_v45 }
 0xe7a   :  { %v2437_v32 = vpop.permute.xlu1 %2436 }
 0xe7b   :  { %v2439_v36 = vunpack.i.h.bf16 %v2437_v32  ;;  %v2438_v35 = vunpack.i.l.bf16 %v2437_v32 }
 0xe7d   :  { %1868 = vmatpush.msrb.mxu2 %v2438_v35  ;;  %1894 = vmatpush.msra.mxu3 %v2439_v36  ;;  %v3214_v35 = vld [vmem:[%s3332_s8 + $0x1] ss:$0 sm:$0xff] }
 0xe7f   :  { %1963 = vmatpush.msra.mxu2 %v3106_v48  ;;  %1986 = vmatpush.msrb.mxu3 %v3100_v47  ;;  %v3161_v47 = vld [vmem:[%s3331_s7 + $0x1] ss:$0 sm:$0xff] }
 0xe80   :  { %v2003_v60 = vadd.f32 %v3161_v47, %v1635_v9  ;;  %v2380_v9 = vld [vmem:[%s3334_s10 + $0x48] sm:$0xff] }
 0xe82   :  { %v3169_v62 = vadd.f32 %v2003_v60, %v3008_v31 }
 0xe84   :  { %v2011_v4 = vsel %vm88_vm1, %v3169_v62, 0.0 }
 0xeb6   :  { %v1759_v38 = vpop.xlane.xlu2 %1758 }
 0xeb7   :  { %v1765_v41 = vsub.f32 %v1749_v20, %v1759_v38 }
 0xeb9   :  { %v1771_v43 = vmul.f32 1.442695, %v1765_v41 }
 0xebb   :  { %2526 = vpow2.f32 %v1771_v43  ;;  %v1762_v46 = vpop.xlane.xlu0 %1761  ;;  %v3219_v43 = vld [vmem:[%s3333_s9 + $0x1] ss:$0 sm:$0xff] }
 0xebc   :  { %v1766_v40 = vsub.f32 %v1750_v23, %v1762_v46 }
 0xebe   :  { %v1773_v49 = vmul.f32 1.442695, %v1766_v40 }
 0xec0   :  { %2528 = vpow2.f32 %v1773_v49 }
 0xec1   :  { %v2527_v50 = vpop.eup %2526 }
 0xec2   :  { %v1781_v37 = vsel %vm196_vm6, %v2527_v50, 0.0 }
 0xec3   :  { %1782 = vadd.xlane.f32.xlu2 %v1781_v37 }
 0xec6   :  { %v2529_v5 = vpop.eup %2528 }
 0xec7   :  { %v1784_v51 = vsel %vm196_vm6, %v2529_v5, 0.0 }
 0xec8   :  { %1785 = vadd.xlane.f32.xlu0 %v1784_v51 }
 0xecd   :  { %v1756_v52 = vpop.xlane.xlu2 %1755 }
 0xece   :  { %v1764_v48 = vsub.f32 %v1748_v27, %v1756_v52 }
 0xed0   :  { %v1769_v54 = vmul.f32 1.442695, %v1764_v48 }
 0xed2   :  { %2530 = vpow2.f32 %v1769_v54 }
 0xed8   :  { %v2531_v55 = vpop.eup %2530 }
 0xed9   :  { %v1778_v57 = vsel %vm196_vm6, %v2531_v55, 0.0 }
 0xeda   :  { %1779 = vadd.xlane.f32.xlu0 %v1778_v57 }
 0xedb   :  { %2441 = vrot.lane.b32.xlu2 %v2440_v56, %s2579_s0 }
 0xee2   :  { %2012 = vadd.xlane.f32.xlu0 %v2011_v4  ;;  %v1777_v6 = vpop.xlane.xlu2 %1776 }
 0xee3   :  { %2532 = vrcp.f32 %v1777_v6 }
 0xee9   :  { %v2533_v8 = vpop.eup %2532 }
 0xeea   :  { %v1791_v14 = vmul.f32 %v2533_v8, %v2525_v34  ;;  %v2407_v8 = vld [vmem:[%s3336_s12 + $0xe8] sm:$0xff] }
 0xf36   :  { %v1783_v63 = vpop.xlane.xlu2 %1782 }
 0xf37   :  { %2534 = vrcp.f32 %v1783_v63  ;;  %v2409_v63 = vld [vmem:[%s3336_s12 + $0xf8] sm:$0xff] }
 0xf3b   :  { %v1786_v0 = vpop.xlane.xlu0 %1785 }
 0xf3c   :  { %2536 = vrcp.f32 %v1786_v0  ;;  %v3241_v0 = vld [vmem:[%s3335_s11 + $0x2] sm:$0x3]  ;;  %s2278_s11 = sshll.u32 %s3338_s14, 4  ;;  %s2279_s11 = int_to_ptr.hbm [resolvable:$true] %s2278_s11 }
 0xf3d   :  { %v2535_v53 = vpop.eup %2534 }
 0xf3e   :  { %v1793_v44 = vmul.f32 %v2535_v53, %v2527_v50  ;;  %v2442_v11 = vpop.permute.xlu2 %2441  ;;  %v2406_v53 = vld [vmem:[%s3336_s12 + $0xe0] sm:$0xff] }
 0xf3f   :  { %v2444_v12 = vunpack.i.h.bf16 %v2442_v11  ;;  %v2443_v61 = vunpack.i.l.bf16 %v2442_v11 }
 0xf40   :  { %2370 = vmatmul.msk.f32.vlgmr.msrb.gmra.mxu2 %vm196_vm6, %v1793_v44 }
 0xf41   :  { %1816 = vmatpush.msrb.mxu1 %v2443_v61  ;;  %1842 = vmatpush.msra.mxu0 %v2444_v12  ;;  %v2405_v12 = vld [vmem:[%s3336_s12 + $0xd8] sm:$0xff] }
 0xf42   :  { %v2537_v31 = vpop.eup %2536  ;;  %2368 = vmatmul.msk.f32.vlgmr.msrb.gmra.mxu1 %vm196_vm6, %v1791_v14  ;;  %2245 = vmatpush.msrb.mxu2 %v2409_v63  ;;  %v2404_v14 = vld [vmem:[%s3336_s12 + $0xd0] sm:$0xff] }
 0xf43   :  { %1940 = vmatpush.msrb.mxu0 %v3120_v59  ;;  %v1794_v15 = vmul.f32 %v2537_v31, %v2529_v5  ;;  %1917 = vmatpush.msra.mxu1 %v3126_v3 }
 0xf45   :  { %2371 = vmatmul.msk.f32.vlgmr.msra.gmra.mxu3 %vm196_vm6, %v1794_v15  ;;  %2099 = vmatpush.msrb.mxu1 %v2385_v58  ;;  %v2403_v15 = vld [vmem:[%s3336_s12 + $0xc8] sm:$0xff] }
 0xf46   :  { %v2399_v58 = vld [vmem:[%s3336_s12 + $0xa8] sm:$0xff] }
 0xf47   :  { %2100 = vmatpush.msrb.mxu1 %v2383_v25 }
 0xf49   :  { %2101 = vmatpush.msrb.mxu1 %v2381_v7  ;;  %v2397_v7 = vld [vmem:[%s3336_s12 + $0x98] sm:$0xff] }
 0xf4b   :  { %2102 = vmatpush.msrb.mxu1 %v2379_v39  ;;  %v2396_v39 = vld [vmem:[%s3336_s12 + $0x90] sm:$0xff] }
 0xf4d   :  { %v1780_v16 = vpop.xlane.xlu0 %1779 }
 0xf4e   :  { %2538 = vrcp.f32 %v1780_v16 }
 0xf54   :  { %v2539_v17 = vpop.eup %2538 }
 0xf55   :  { %v1792_v18 = vmul.f32 %v2539_v17, %v2531_v55  ;;  %v2013_v19 = vpop.xlane.xlu0 %2012  ;;  %v2402_v17 = vld [vmem:[%s3336_s12 + $0xc0] sm:$0xff] }
 0xf56   :  { %v2017_v20 = vmul.f32 %v2013_v19, %v2678_v13 }
 0xf57   :  { %2369 = vmatmul.msk.f32.vlgmr.msra.gmra.mxu0 %vm196_vm6, %v1792_v18 }
 0xf58   :  { %v2019_v21 = vsub.f32 %v3169_v62, %v2017_v20  ;;  %2122 = vmatpush.msra.mxu0 %v2386_v2  ;;  %v2401_v20 = vld [vmem:[%s3336_s12 + $0xb8] sm:$0xff] }
 0xf5a   :  { %v2021_v10 = vmul.f32 %v2019_v21, %v2019_v21  ;;  %2123 = vmatpush.msra.mxu0 %v2384_v42 }
 0xf5c   :  { %v2023_v23 = vsel %vm88_vm1, %v2021_v10, 0.0  ;;  %2124 = vmatpush.msra.mxu0 %v2382_v1 }
 0xf5d   :  { %2024 = vadd.xlane.f32.xlu1 %v2023_v23  ;;  %v2400_v23 = vld [vmem:[%s3336_s12 + $0xb0] sm:$0xff] }
 0xf5e   :  { %2125 = vmatpush.msra.mxu0 %v2380_v9 }
 0xfbf   :  { %v1818_v59 = vpop.f32.mrf.mxu1 }
 0xfc0   :  { %2372 = vmatmul.msk.f32.vlgmr.msra.gmra.mxu1 %vm196_vm6, %v1818_v59 }
 0xfc3   :  { %v1870_v3 = vpop.f32.mrf.mxu2 }
 0xfc4   :  { %2374 = vmatmul.msk.f32.vlgmr.msra.gmra.mxu2 %vm196_vm6, %v1870_v3 }
 0xfc8   :  { %v1896_v24 = vpop.f32.mrf.mxu3 }
 0xfc9   :  { %2375 = vmatmul.msk.f32.vlgmr.msrb.gmra.mxu3 %vm196_vm6, %v1896_v24  ;;  %v2398_v24 = vld [vmem:[%s3336_s12 + $0xa0] sm:$0xff] }
 0xfd0   :  { %v2025_v26 = vpop.xlane.xlu1 %2024 }
 0xfd1   :  { %v2029_v27 = vmul.f32 %v2025_v26, %v2678_v13 }
 0xfd3   :  { %v2031_v28 = vadd.f32 1e-05, %v2029_v27  ;;  %v2395_v27 = vld [vmem:[%s3336_s12 + $0x88] sm:$0xff] }
 0xfd4   :  { %v1844_v29 = vpop.f32.mrf.mxu0 }
 0xfd5   :  { %2540 = vrsqrt.f32 %v2031_v28  ;;  %2373 = vmatmul.msk.f32.vlgmr.msrb.gmra.mxu0 %vm196_vm6, %v1844_v29  ;;  %vm2039_vm2 = vweird.f32 %v2031_v28 }
 0xfdb   :  { %v2541_v30 = vpop.eup %2540 }
 0xfdc   :  { %v2034_v33 = vmul.f32 %v2541_v30, %v2031_v28  ;;  %vm2040_vm0 = vweird.f32 %v2541_v30  ;;  %v2394_v28 = vld [vmem:[%s3336_s12 + $0x80] sm:$0xff] }
 0xfdd   :  { %vm2041_vm3 = vmor %vm2039_vm2, %vm2040_vm0 }
 0xfde   :  { %v2035_v34 = vmul.f32 %v2541_v30, %v2034_v33 }
 0xfe0   :  { %v2036_v45 = vmul.f32 0.5, %v2035_v34 }
 0xfe2   :  { %v2037_v32 = vsub.f32 1.5, %v2036_v45 }
 0xfe4   :  { %v2038_v36 = vmul.f32 %v2541_v30, %v2037_v32 }
 0xfe6   :  { %v2042_v38 = vsel %vm2041_vm3, %v2541_v30, %v2038_v36 }
 0xfe7   :  { %v2053_v41 = vmul.f32 %v2042_v38, %v2019_v21 }
 0xfe9   :  { %v2058_v46 = vmul.f32 %v3214_v35, %v2053_v41 }
 0xfeb   :  { %v2063_v40 = vadd.f32 %v3219_v43, %v2058_v46 }
 0xfed   :  { %2388 = vmatmul.msk.f32.vlgmr.msrb.gmra.mxu1 %vm88_vm1, %v2063_v40  ;;  %2390 = vmatmul.msk.f32.vlgmr.msra.gmra.mxu0 %vm88_vm1, %v2063_v40 }
0x103d   :  { %v1919_v49 = vpop.f32.mrf.mxu1 }
0x103e   :  { %v1991_v5 = vsel %vm88_vm1, %v1919_v49, 0.0 }
0x1047   :  { %v1965_v50 = vpop.f32.mrf.mxu2 }
0x1048   :  { %v1994_v54 = vsel %vm88_vm1, %v1965_v50, 0.0 }
0x104c   :  { %v1988_v52 = vpop.f32.mrf.mxu3 }
0x104d   :  { %v1996_v56 = vsel %vm88_vm1, %v1988_v52, 0.0 }
0x1052   :  { %v1942_v37 = vpop.f32.mrf.mxu0 }
0x1053   :  { %v1992_v51 = vsel %vm88_vm1, %v1942_v37, 0.0 }
0x1054   :  { %v1993_v48 = vadd.f32 %v1992_v51, %v1991_v5 }
0x1056   :  { %v1995_v55 = vadd.f32 %v1994_v54, %v1993_v48 }
0x1058   :  { %v1997_v57 = vadd.f32 %v1996_v56, %v1995_v55  ;;  %v2077_v56 = vperm.slane %v3241_v0, 0 }
0x105a   :  { %v2004_v60 = vadd.f32 %v3161_v47, %v1997_v57  ;;  %v2408_v47 = vld [vmem:[%s3336_s12 + $0xf0] sm:$0xff] }
0x105b   :  { %2246 = vmatpush.msrb.mxu2 %v2408_v47 }
0x105c   :  { %v3231_v4 = vadd.f32 %v2004_v60, %v3016_v22  ;;  %v2078_v22 = vperm.slane %v3241_v0, 1 }
0x105d   :  { %2247 = vmatpush.msrb.mxu2 %v2407_v8 }
0x105e   :  { %v2014_v6 = vsel %vm88_vm1, %v3231_v4, 0.0 }
0x105f   :  { %2015 = vadd.xlane.f32.xlu0 %v2014_v6  ;;  %2248 = vmatpush.msrb.mxu2 %v2406_v53 }
0x1061   :  { %2249 = vmatpush.msrb.mxu2 %v2405_v12 }
0x1063   :  { %2250 = vmatpush.msrb.mxu2 %v2404_v14 }
0x1065   :  { %2251 = vmatpush.msrb.mxu2 %v2403_v15 }
0x1067   :  { %2252 = vmatpush.msrb.mxu2 %v2402_v17 }
0x1069   :  { %2253 = vmatpush.msrb.mxu2 %v2401_v20 }
0x106a   :  { %v2127_v44 = vpop.f32.mrf.mxu0  ;;  %v2104_v60 = vpop.f32.mrf.mxu1 }
0x106b   :  { %v3255_v11 = vadd.f32 %v2127_v44, %v2078_v22  ;;  %2254 = vmatpush.msrb.mxu2 %v2400_v23  ;;  %v2105_v47 = vadd.f32 %v2104_v60, %v2077_v56 }
0x106d   :  { %v2135_v61 = vmul.f32 0.70710677, %v3255_v11  ;;  %2255 = vmatpush.msrb.mxu2 %v2399_v58  ;;  %v2133_v6 = vmul.f32 0.5, %v3255_v11  ;;  %v3304_v11 = vld [vmem:[%s3337_s13 + $0x1] ss:$0 sm:$0xff]  ;;  %s2580_s13 = smov [#allocation2]  }
0x106e   :  { %s2276_s7 = sshll.u32 %s2580_s13, 4  ;;  %s2277_s7 = int_to_ptr.vmem [resolvable:$true] %s2276_s7 }
0x106f   :  { %v2137_v31 = vmul.f32 %v2135_v61, %v2135_v61  ;;  %2256 = vmatpush.msrb.mxu2 %v2398_v24 }
0x1071   :  { %v2138_v16 = vmin.f32 %v2137_v31, 16.0  ;;  %2257 = vmatpush.msrb.mxu2 %v2397_v7 }
0x1073   :  { %v2139_v18 = vmul.f32 2.1237322e-06, %v2138_v16  ;;  %v2150_v19 = vmul.f32 3.8918573e-05, %v2138_v16  ;;  %2258 = vmatpush.msrb.mxu2 %v2396_v39 }
0x1075   :  { %v2140_v21 = vadd.f32 0.00028619796, %v2139_v18  ;;  %v2151_v10 = vadd.f32 0.001143296, %v2150_v19  ;;  %2259 = vmatpush.msrb.mxu2 %v2395_v27 }
0x1077   :  { %v2141_v59 = vmul.f32 %v2140_v21, %v2138_v16  ;;  %v2152_v3 = vmul.f32 %v2151_v10, %v2138_v16  ;;  %2260 = vmatpush.msrb.mxu2 %v2394_v28 }
0x1079   :  { %v2153_v2 = vadd.f32 0.014752088, %v2152_v3  ;;  %v2142_v25 = vadd.f32 0.0036580483, %v2141_v59 }
0x107b   :  { %v2154_v42 = vmul.f32 %v2153_v2, %v2138_v16  ;;  %v2143_v9 = vmul.f32 %v2142_v25, %v2138_v16 }
0x107d   :  { %v2155_v1 = vadd.f32 0.112945676, %v2154_v42  ;;  %v2144_v30 = vadd.f32 0.05243302, %v2143_v9 }
0x107f   :  { %v2156_v26 = vmul.f32 %v2155_v1, %v2138_v16  ;;  %v2145_v45 = vmul.f32 %v2144_v30, %v2138_v16 }
0x1081   :  { %v2157_v29 = vadd.f32 0.4994258, %v2156_v26  ;;  %v2146_v32 = vadd.f32 0.18741608, %v2145_v45 }
0x1083   :  { %v2158_v33 = vmul.f32 %v2157_v29, %v2138_v16  ;;  %v2147_v38 = vmul.f32 %v2146_v32, %v2138_v16 }
0x1085   :  { %v2159_v34 = vadd.f32 1.0, %v2158_v33  ;;  %v2148_v49 = vadd.f32 1.1283791, %v2147_v38 }
0x1087   :  { %2542 = vrcp.f32 %v2159_v34  ;;  %v2171_v40 = vand.u32 2147483648, %v2159_v34  ;;  %v2169_v37 = vand.u32 2147483647, %v2159_v34  ;;  %vm2165_vm4 = vweird.f32 %v2159_v34 }
0x1088   :  { %v2149_v52 = vmul.f32 %v2148_v49, %v2135_v61 }
0x1089   :  { %v2172_v51 = vor.u32 1.1754944e-38, %v2171_v40  ;;  %vm2170_vm7 = vcmp.eq.f32.partialorder %v2169_v37, 8.507059e+37 }
0x108d   :  { %v2543_v36 = vpop.eup %2542 }
0x108e   :  { %v2161_v41 = vmul.f32 %v2543_v36, %v2159_v34  ;;  %vm2166_vm6 = vweird.f32 %v2543_v36 }
0x108f   :  { %vm2167_vm5 = vmor %vm2165_vm4, %vm2166_vm6 }
0x1090   :  { %v2162_v46 = vsub.f32 1.0, %v2161_v41 }
0x1092   :  { %v2163_v50 = vmul.f32 %v2543_v36, %v2162_v46 }
0x1094   :  { %v2164_v5 = vadd.f32 %v2543_v36, %v2163_v50 }
0x1096   :  { %v2168_v48 = vsel %vm2167_vm5, %v2543_v36, %v2164_v5 }
0x1097   :  { %v2173_v54 = vsel %vm2170_vm7, %v2172_v51, %v2168_v48 }
0x1098   :  { %v2174_v55 = vmul.f32 %v2173_v54, %v2149_v52 }
0x109a   :  { %v2392_v57 = vclamps-f32 %v2174_v55, 1.0 }
0x109c   :  { %v2217_v63 = vadd.f32 1.0, %v2392_v57 }
0x109e   :  { %v2219_v8 = vmul.f32 %v2217_v63, %v2133_v6 }
0x10a0   :  { %v2221_v53 = vmul.f32 %v2219_v8, %v2105_v47 }
0x10a2   :  { %2261 = vmatmul.f32.vlgmr.msrb.gmra.mxu2 %v2221_v53 }
0x10d2   :  { %v2016_v44 = vpop.xlane.xlu0 %2015 }
0x10d3   :  { %v2018_v12 = vmul.f32 %v2016_v44, %v2678_v13 }
0x10d5   :  { %v2020_v61 = vsub.f32 %v3231_v4, %v2018_v12 }
0x10d7   :  { %v2022_v14 = vmul.f32 %v2020_v61, %v2020_v61 }
0x10d9   :  { %v2026_v31 = vsel %vm88_vm1, %v2022_v14, 0.0 }
0x10da   :  { %2027 = vadd.xlane.f32.xlu0 %v2026_v31 }
0x1125   :  { %v2262_v15 = vpop.f32.mrf.mxu2 }
0x1126   :  { %v2263_v16 = vadd.f32 %v3304_v11, %v2262_v15 }
0x1128   :  { %v2268_v17 = vadd.f32 %v2263_v16, %v3169_v62 }
0x112a   :  { %2270 = vst.msk [vmem:[#allocation2] sm:$0xff] %vm88_vm1, %v2268_v17 }
0x114d   :  { %v2028_v18 = vpop.xlane.xlu0 %2027 }
0x114e   :  { %v2030_v19 = vmul.f32 %v2028_v18, %v2678_v13 }
0x1150   :  { %v2032_v20 = vadd.f32 1e-05, %v2030_v19 }
0x1152   :  { %2544 = vrsqrt.f32 %v2032_v20  ;;  %vm2049_vm9 = vweird.f32 %v2032_v20 }
0x1158   :  { %v2545_v21 = vpop.eup %2544 }
0x1159   :  { %v2044_v10 = vmul.f32 %v2545_v21, %v2032_v20  ;;  %vm2050_vm8 = vweird.f32 %v2545_v21 }
0x115a   :  { %vm2051_vm10 = vmor %vm2049_vm9, %vm2050_vm8 }
0x115b   :  { %v2045_v23 = vmul.f32 %v2545_v21, %v2044_v10 }
0x115d   :  { %v2046_v59 = vmul.f32 0.5, %v2045_v23 }
0x115f   :  { %v2047_v3 = vsub.f32 1.5, %v2046_v59 }
0x1161   :  { %v2048_v58 = vmul.f32 %v2545_v21, %v2047_v3 }
0x1163   :  { %v2052_v2 = vsel %vm2051_vm10, %v2545_v21, %v2048_v58 }
0x1164   :  { %v2054_v24 = vmul.f32 %v2052_v2, %v2020_v61 }
0x1166   :  { %v2059_v62 = vmul.f32 %v3214_v35, %v2054_v24 }
0x1168   :  { %v2064_v25 = vadd.f32 %v3219_v43, %v2059_v62 }
0x116a   :  { %2389 = vmatmul.msk.f32.gmra.mxu1 %vm88_vm1, %v2064_v25  ;;  %2391 = vmatmul.msk.f32.gmra.mxu0 %vm88_vm1, %v2064_v25 }
0x11e7   :  { %v2130_v13 = vpop.f32.mrf.mxu0  ;;  %v2107_v53 = vpop.f32.mrf.mxu1 }
0x11e8   :  { %v2131_v42 = vadd.f32 %v2130_v13, %v2078_v22  ;;  %v2108_v61 = vadd.f32 %v2107_v53, %v2077_v56 }
0x11ea   :  { %v2136_v7 = vmul.f32 0.70710677, %v2131_v42  ;;  %v2134_v44 = vmul.f32 0.5, %v2131_v42 }
0x11ec   :  { %v2177_v1 = vmul.f32 %v2136_v7, %v2136_v7 }
0x11ee   :  { %v2178_v39 = vmin.f32 %v2177_v1, 16.0 }
0x11f0   :  { %v2179_v9 = vmul.f32 2.1237322e-06, %v2178_v39  ;;  %v2190_v26 = vmul.f32 3.8918573e-05, %v2178_v39 }
0x11f2   :  { %v2180_v27 = vadd.f32 0.00028619796, %v2179_v9  ;;  %v2191_v28 = vadd.f32 0.001143296, %v2190_v26 }
0x11f4   :  { %v2181_v29 = vmul.f32 %v2180_v27, %v2178_v39  ;;  %v2192_v30 = vmul.f32 %v2191_v28, %v2178_v39 }
0x11f6   :  { %v2193_v35 = vadd.f32 0.014752088, %v2192_v30  ;;  %v2182_v33 = vadd.f32 0.0036580483, %v2181_v29 }
0x11f8   :  { %v2194_v43 = vmul.f32 %v2193_v35, %v2178_v39  ;;  %v2183_v45 = vmul.f32 %v2182_v33, %v2178_v39 }
0x11fa   :  { %v2195_v34 = vadd.f32 0.112945676, %v2194_v43  ;;  %v2184_v38 = vadd.f32 0.05243302, %v2183_v45 }
0x11fc   :  { %v2196_v32 = vmul.f32 %v2195_v34, %v2178_v39  ;;  %v2185_v22 = vmul.f32 %v2184_v38, %v2178_v39 }
0x11fe   :  { %v2197_v36 = vadd.f32 0.4994258, %v2196_v32  ;;  %v2186_v40 = vadd.f32 0.18741608, %v2185_v22 }
0x1200   :  { %v2198_v41 = vmul.f32 %v2197_v36, %v2178_v39  ;;  %v2187_v50 = vmul.f32 %v2186_v40, %v2178_v39 }
0x1202   :  { %v2199_v46 = vadd.f32 1.0, %v2198_v41  ;;  %v2188_v52 = vadd.f32 1.1283791, %v2187_v50 }
0x1204   :  { %2546 = vrcp.f32 %v2199_v46  ;;  %v2211_v51 = vand.u32 2147483648, %v2199_v46  ;;  %v2209_v54 = vand.u32 2147483647, %v2199_v46  ;;  %vm2205_vm12 = vweird.f32 %v2199_v46 }
0x1205   :  { %v2189_v60 = vmul.f32 %v2188_v52, %v2136_v7 }
0x1206   :  { %v2212_v57 = vor.u32 1.1754944e-38, %v2211_v51  ;;  %vm2210_vm14 = vcmp.eq.f32.partialorder %v2209_v54, 8.507059e+37 }
0x120a   :  { %v2547_v49 = vpop.eup %2546 }
0x120b   :  { %v2201_v37 = vmul.f32 %v2547_v49, %v2199_v46  ;;  %vm2206_vm11 = vweird.f32 %v2547_v49 }
0x120c   :  { %vm2207_vm13 = vmor %vm2205_vm12, %vm2206_vm11 }
0x120d   :  { %v2202_v5 = vsub.f32 1.0, %v2201_v37 }
0x120f   :  { %v2203_v48 = vmul.f32 %v2547_v49, %v2202_v5 }
0x1211   :  { %v2204_v55 = vadd.f32 %v2547_v49, %v2203_v48 }
0x1213   :  { %v2208_v6 = vsel %vm2207_vm13, %v2547_v49, %v2204_v55 }
0x1214   :  { %v2213_v63 = vsel %vm2210_vm14, %v2212_v57, %v2208_v6 }
0x1215   :  { %v2214_v47 = vmul.f32 %v2213_v63, %v2189_v60 }
0x1217   :  { %v2393_v8 = vclamps-f32 %v2214_v47, 1.0 }
0x1219   :  { %v2218_v12 = vadd.f32 1.0, %v2393_v8 }
0x121b   :  { %v2220_v14 = vmul.f32 %v2218_v12, %v2134_v44 }
0x121d   :  { %v2222_v31 = vmul.f32 %v2220_v14, %v2108_v61 }
0x121f   :  { %2264 = vmatmul.f32.gmra.mxu2 %v2222_v31 }
0x12a2   :  { %v2265_v15 = vpop.f32.mrf.mxu2 }
0x12a3   :  { %v2266_v16 = vadd.f32 %v3304_v11, %v2265_v15 }
0x12a5   :  { %v2269_v17 = vadd.f32 %v2266_v16, %v3231_v4 }
0x12a7   :  { %2271 = vst.msk [vmem:[#allocation2 + $0x8] sm:$0xff] %vm88_vm1, %v2269_v17 }
0x12a8   :  { %2284 = dma.vmem_to_hbm [thread:$0]  %s2277_s7, 256, %s2279_s11, [#allocation3], %s2581_s30, %s2581_s30, %s2582_s15  }
0x12a9   :  { %2572 = dma.done.wait [#allocation3], 256  }
0x12aa   :  { %2573 = vsyncadd [#allocation3], 4294967040 }
0x12ab   :  { %2289 = vsyncpa [#allocation3], 1 }

</bundles_post_ra>
